<compile_context>
chip_gen: v7x
topology: tpu7x:2x2x1
jax: 0.10.0
libtpu: 0.0.40
codegen_flags: <defaults>
</compile_context>

<pallas_src>
import functools

import jax
import jax.numpy as jnp
from jax.experimental import pallas as pl
from jax.experimental.pallas import tpu as pltpu


def _threshold_kernel(tgt_ref, o1_ref, o2_ref, o3_ref, o4_ref, o5_ref, o6_ref,
                      o7_ref, m_ref, thr_ref, pmax_ref, *, temperature, n_rows):
    tile_n, C = o1_ref.shape
    col = jax.lax.broadcasted_iota(jnp.int32, (tile_n, C), 1)   # class index per lane
    tgt = tgt_ref[...]                                          # (tile_n, 1) int32
    tgt_mask = (col == tgt)                                     # (tile_n, C)

    def margin_and_top(o_ref):
        x = o_ref[...].astype(jnp.float32)                      # native dtype -> f32 in-kernel
        top = jnp.max(x, axis=-1, keepdims=True)                # (tile_n, 1)
        eq = (x == top)
        # first occurrence of the max (mimics torch.sort d[0]/d[1] with duplicates)
        first_idx = jnp.min(jnp.where(eq, col, C), axis=-1, keepdims=True)
        second = jnp.max(jnp.where(col == first_idx, -jnp.inf, x),
                         axis=-1, keepdims=True)                # (tile_n, 1)
        # "target hits the argmax" test: reuse `eq` instead of a masked value-sum.
        hit = jnp.max(jnp.where(jnp.logical_and(tgt_mask, eq), 1, 0),
                      axis=-1, keepdims=True)
        d = jnp.where(hit > 0, top - second, 0.0)               # (tile_n, 1)
        return d, top

    refs = (o1_ref, o2_ref, o3_ref, o4_ref, o5_ref, o6_ref, o7_ref, m_ref)
    margins = []
    tops = []                                                   # outputs1..7 only
    for k, r in enumerate(refs):
        d, t = margin_and_top(r)
        margins.append(d)
        if k < 7:
            tops.append(t)

    # Assemble the 8 margin columns into one (tile_n, 8) slab (tiny relative to the
    # (tile_n, C) passes above), then do the row softmax and store with one write.
    inv_t = 1.0 / float(temperature)
    col8 = jax.lax.broadcasted_iota(jnp.int32, (tile_n, 8), 1)
    logits = jnp.zeros((tile_n, 8), jnp.float32)
    for k, d in enumerate(margins):
        logits = jnp.where(col8 == k, d * inv_t, logits)

    lmax = jnp.max(logits, axis=-1, keepdims=True)
    e = jnp.exp(logits - lmax)
    tot = jnp.sum(e, axis=-1, keepdims=True)
    thr_ref[...] = e / tot                                      # exact divide (hidden under DMA)

    # Per-tile partial global max from the per-row tops (mimic excluded).
    # Mask rows beyond the true batch size (ragged trailing tile reads garbage).
    t_all = tops[0]
    for t in tops[1:]:
        t_all = jnp.maximum(t_all, t)
    row = jax.lax.broadcasted_iota(jnp.int32, (tile_n, 1), 0)
    valid = row < (n_rows - pl.program_id(0) * tile_n)
    t_all = jnp.where(valid, t_all, -jnp.inf)
    gmax = jnp.max(t_all, axis=0, keepdims=True)                # (1, 1)
    pmax_ref[...] = jnp.broadcast_to(gmax, pmax_ref.shape)      # (8, 128) aligned block


def _vmem_limit_bytes():
    # Chip-aware VMEM budget: 3/4 of physical, capped at 96 MiB (v5e/v6e have
    # 128 MiB, v7x has 64 MiB). Falls back to a v7x-safe 48 MiB if the query fails.
    cap = 64 * 1024 * 1024
    try:
        cap = int(pltpu.get_tpu_info().vmem_capacity_bytes)
    except Exception:
        pass
    return int(min((cap * 3) // 4, 96 * 1024 * 1024))


def _choose_tile_n(n, c, itemsize, vmem_limit):
    # Sublane-packing multiple for the native logit dtype (f32->8, bf16->16, int8->32).
    sub = max(8, 32 // max(1, itemsize))
    # Per-row VMEM bytes:
    #   2 x (8 logit tiles in native dtype + int32 target col)  -> double-buffered input DMA
    #   ~8 x C f32                                              -> live in-kernel temporaries
    #   2 x 8 f32                                               -> double-buffered thr output
    per_row = 2 * (8 * c * itemsize + 4) + 8 * c * 4 + 2 * 8 * 4
    budget = (vmem_limit * 3) // 4          # headroom for compiler temporaries / pmax output
    t = max(sub, (budget // per_row // sub) * sub)
    if n <= t:
        return n                            # single block == full array dims (always legal)
    return t


def threshold_weights7(outputs1, outputs2, outputs3, outputs4, outputs5,
                       outputs6, outputs7, mimic, targets, n_test,
                       temperature=2.0, tile_n=None):
    logits_in = (outputs1, outputs2, outputs3, outputs4,
                 outputs5, outputs6, outputs7, mimic)
    N, C = outputs1.shape
    assert C >= 2, "reference semantics need at least 2 classes (d[1])"
    assert 0 <= n_test <= N

    itemsize = jnp.dtype(outputs1.dtype).itemsize
    vmem_limit = _vmem_limit_bytes()
    if tile_n is None:
        tile_n = _choose_tile_n(N, C, itemsize, vmem_limit)
    num_tiles = pl.cdiv(N, tile_n)

    # Only wrapper-side prep: a cheap (N, 1) int32 view of the targets.
    tgt2d = targets.astype(jnp.int32).reshape(N, 1)

    logit_spec = pl.BlockSpec((tile_n, C), lambda i: (i, 0))
    grid_spec = pltpu.PrefetchScalarGridSpec(
        num_scalar_prefetch=0,
        grid=(num_tiles,),
        in_specs=[pl.BlockSpec((tile_n, 1), lambda i: (i, 0))] + [logit_spec] * 8,
        out_specs=(pl.BlockSpec((tile_n, 8), lambda i: (i, 0)),
                   pl.BlockSpec((8, 128), lambda i: (i, 0))),
    )

    thr, pmax_partial = pl.pallas_call(
        functools.partial(_threshold_kernel,
                          temperature=float(temperature), n_rows=N),
        out_shape=(jax.ShapeDtypeStruct((N, 8), jnp.float32),
                   jax.ShapeDtypeStruct((num_tiles * 8, 128), jnp.float32)),
        grid_spec=grid_spec,
        compiler_params=pltpu.CompilerParams(
            dimension_semantics=("parallel",),
            vmem_limit_bytes=vmem_limit),
    )(tgt2d, *logits_in)

    # Glue: reduce per-tile partial maxima and keep rows [0, n_test) (the PyTorch
    # loop only emits those rows; max_preds covers all N rows of outputs1..7).
    max_preds = jnp.max(pmax_partial)
    return max_preds, thr[:n_test]


# ----------------------------------------------------------------------------
# Pure-JAX mirror of the PyTorch loop (for correctness checks).
# ----------------------------------------------------------------------------
def _reference(outs, mimic, targets, n_test, T):
    outs_f = [o.astype(jnp.float32) for o in outs]
    mimic_f = mimic.astype(jnp.float32)

    def row_margin(x, t):
        order = jnp.sort(x)[::-1]
        return jnp.where(x[t] == order[0], order[0] - order[1], 0.0)

    rows = []
    for i in range(n_test):
        ms = jnp.stack([row_margin(o[i], targets[i]) for o in outs_f + [mimic_f]])
        rows.append(jax.nn.softmax(ms / T))
    out_thr = (jnp.stack(rows, axis=0) if n_test > 0
               else jnp.zeros((0, 8), jnp.float32))
    max_preds = jnp.max(jnp.stack(outs_f, axis=0))
    return max_preds, out_thr


def _make_inputs(key, n, c, dtype):
    ks = jax.random.split(key, 9)
    outs = [jax.random.normal(ks[i], (n, c)).astype(dtype) for i in range(7)]
    mimic = jax.random.normal(ks[7], (n, c)).astype(dtype)
    # mix of rows where the target is / is not the argmax of outputs1
    targets = jnp.where(jnp.arange(n) % 2 == 0,
                        jnp.argmax(outs[0].astype(jnp.float32), axis=-1),
                        jax.random.randint(ks[8], (n,), 0, c)).astype(jnp.int32)
    return outs, mimic, targets


if __name__ == "__main__":
    T = 2.0
    key = jax.random.PRNGKey(0)
    k1, k2, k3 = jax.random.split(key, 3)

    # Case 1: single full-array block (N not a multiple of 8, n_test < N).
    N, C, n_test = 10, 16, 7
    outs, mimic, targets = _make_inputs(k1, N, C, jnp.float32)
    max_preds, thr = threshold_weights7(*outs, mimic, targets, n_test, temperature=T)
    jax.block_until_ready((max_preds, thr))
    ref_max, ref_thr = _reference(outs, mimic, targets, n_test, T)
    assert thr.shape == (n_test, 8)
    assert jnp.allclose(max_preds, ref_max, atol=1e-5), (max_preds, ref_max)
    assert jnp.allclose(thr, ref_thr, atol=1e-5), (thr, ref_thr)

    # Case 2: multi-tile grid with a ragged trailing block (20 rows, tile_n=8 ->
    # tiles of 8/8/4) -> exercises in-kernel masking of the partial tile and the
    # per-tile partial-max reduction.
    N2, C2 = 20, 16
    outs2, mimic2, targets2 = _make_inputs(k2, N2, C2, jnp.float32)
    max_preds2, thr2 = threshold_weights7(*outs2, mimic2, targets2, N2,
                                          temperature=T, tile_n=8)
    jax.block_until_ready((max_preds2, thr2))
    ref_max2, ref_thr2 = _reference(outs2, mimic2, targets2, N2, T)
    assert jnp.allclose(max_preds2, ref_max2, atol=1e-5), (max_preds2, ref_max2)
    assert jnp.allclose(thr2, ref_thr2, atol=1e-5), (thr2, ref_thr2)

    # Case 3: bf16 inputs streamed natively (no wrapper astype), upcast in-kernel.
    N3, C3 = 16, 16
    outs3, mimic3, targets3 = _make_inputs(k3, N3, C3, jnp.bfloat16)
    max_preds3, thr3 = threshold_weights7(*outs3, mimic3, targets3, N3, temperature=T)
    jax.block_until_ready((max_preds3, thr3))
    ref_max3, ref_thr3 = _reference(outs3, mimic3, targets3, N3, T)
    assert jnp.allclose(max_preds3, ref_max3, atol=1e-5), (max_preds3, ref_max3)
    assert jnp.allclose(thr3, ref_thr3, atol=1e-5), (thr3, ref_thr3)

    print("KERNEL_OK")
</pallas_src>

<mosaic_0001>
module attributes {stable_mosaic.version = 11 : i64} {
  func.func @_threshold_kernel(%arg0: i32, %arg1: memref<10x1xi32, #tpu.memory_space<vmem>>, %arg2: memref<10x16xf32, #tpu.memory_space<vmem>>, %arg3: memref<10x16xf32, #tpu.memory_space<vmem>>, %arg4: memref<10x16xf32, #tpu.memory_space<vmem>>, %arg5: memref<10x16xf32, #tpu.memory_space<vmem>>, %arg6: memref<10x16xf32, #tpu.memory_space<vmem>>, %arg7: memref<10x16xf32, #tpu.memory_space<vmem>>, %arg8: memref<10x16xf32, #tpu.memory_space<vmem>>, %arg9: memref<10x16xf32, #tpu.memory_space<vmem>>, %arg10: memref<10x8xf32, #tpu.memory_space<vmem>>, %arg11: memref<8x128xf32, #tpu.memory_space<vmem>>) attributes {dimension_semantics = [#tpu.dimension_semantics<parallel>], iteration_bounds = array<i64: 1>, scalar_prefetch = 0 : i64, scratch_operands = 0 : i64, tpu.core_type = #tpu.core_type<tc>, window_params = [{transform_indices = @transform_0, window_bounds = array<i64: 10, 1>}, {transform_indices = @transform_1, window_bounds = array<i64: 10, 16>}, {transform_indices = @transform_2, window_bounds = array<i64: 10, 16>}, {transform_indices = @transform_3, window_bounds = array<i64: 10, 16>}, {transform_indices = @transform_4, window_bounds = array<i64: 10, 16>}, {transform_indices = @transform_5, window_bounds = array<i64: 10, 16>}, {transform_indices = @transform_6, window_bounds = array<i64: 10, 16>}, {transform_indices = @transform_7, window_bounds = array<i64: 10, 16>}, {transform_indices = @transform_8, window_bounds = array<i64: 10, 16>}, {transform_indices = @transform_9, window_bounds = array<i64: 10, 8>}, {transform_indices = @transform_10, window_bounds = array<i64: 8, 128>}]} {
    %0 = tpu.iota {dimensions = array<i32: 1>} : vector<10x16xi32>
    %c0 = arith.constant 0 : index
    %c0_0 = arith.constant 0 : index
    %1 = vector.load %arg1[%c0, %c0_0] : memref<10x1xi32, #tpu.memory_space<vmem>>, vector<10x1xi32>
    %2 = vector.broadcast %1 : vector<10x1xi32> to vector<10x16xi32>
    %3 = arith.cmpi eq, %0, %2 : vector<10x16xi32>
    %c0_1 = arith.constant 0 : index
    %c0_2 = arith.constant 0 : index
    %4 = vector.load %arg2[%c0_1, %c0_2] : memref<10x16xf32, #tpu.memory_space<vmem>>, vector<10x16xf32>
    %cst = arith.constant dense<0xFF800000> : vector<10xf32>
    %5 = vector.multi_reduction <maximumf>, %4, %cst [1] : vector<10x16xf32> to vector<10xf32>
    %6 = vector.shape_cast %5 : vector<10xf32> to vector<10x1xf32>
    %7 = vector.broadcast %6 : vector<10x1xf32> to vector<10x16xf32>
    %8 = arith.cmpf oeq, %4, %7 : vector<10x16xf32>
    %c16_i32 = arith.constant 16 : i32
    %9 = vector.broadcast %c16_i32 : i32 to vector<10x16xi32>
    %10 = arith.select %8, %0, %9 : vector<10x16xi1>, vector<10x16xi32>
    %cst_3 = arith.constant dense<2147483647> : vector<10xi32>
    %11 = vector.multi_reduction <minsi>, %10, %cst_3 [1] : vector<10x16xi32> to vector<10xi32>
    %12 = vector.shape_cast %11 : vector<10xi32> to vector<10x1xi32>
    %13 = vector.broadcast %12 : vector<10x1xi32> to vector<10x16xi32>
    %14 = arith.cmpi eq, %0, %13 : vector<10x16xi32>
    %cst_4 = arith.constant 0xFF800000 : f32
    %15 = vector.broadcast %cst_4 : f32 to vector<10x16xf32>
    %16 = arith.select %14, %15, %4 : vector<10x16xi1>, vector<10x16xf32>
    %cst_5 = arith.constant dense<0xFF800000> : vector<10xf32>
    %17 = vector.multi_reduction <maximumf>, %16, %cst_5 [1] : vector<10x16xf32> to vector<10xf32>
    %18 = vector.shape_cast %17 : vector<10xf32> to vector<10x1xf32>
    %19 = arith.andi %3, %8 : vector<10x16xi1>
    %c1_i32 = arith.constant 1 : i32
    %c0_i32 = arith.constant 0 : i32
    %20 = vector.broadcast %c1_i32 : i32 to vector<10x16xi32>
    %21 = vector.broadcast %c0_i32 : i32 to vector<10x16xi32>
    %22 = arith.select %19, %20, %21 : vector<10x16xi1>, vector<10x16xi32>
    %cst_6 = arith.constant dense<-2147483648> : vector<10xi32>
    %23 = vector.multi_reduction <maxsi>, %22, %cst_6 [1] : vector<10x16xi32> to vector<10xi32>
    %24 = vector.shape_cast %23 : vector<10xi32> to vector<10x1xi32>
    %c0_i32_7 = arith.constant 0 : i32
    %25 = vector.broadcast %c0_i32_7 : i32 to vector<10x1xi32>
    %26 = arith.cmpi sgt, %24, %25 : vector<10x1xi32>
    %27 = arith.subf %6, %18 : vector<10x1xf32>
    %cst_8 = arith.constant 0.000000e+00 : f32
    %28 = vector.broadcast %cst_8 : f32 to vector<10x1xf32>
    %29 = arith.select %26, %27, %28 : vector<10x1xi1>, vector<10x1xf32>
    %c0_9 = arith.constant 0 : index
    %c0_10 = arith.constant 0 : index
    %30 = vector.load %arg3[%c0_9, %c0_10] : memref<10x16xf32, #tpu.memory_space<vmem>>, vector<10x16xf32>
    %cst_11 = arith.constant dense<0xFF800000> : vector<10xf32>
    %31 = vector.multi_reduction <maximumf>, %30, %cst_11 [1] : vector<10x16xf32> to vector<10xf32>
    %32 = vector.shape_cast %31 : vector<10xf32> to vector<10x1xf32>
    %33 = vector.broadcast %32 : vector<10x1xf32> to vector<10x16xf32>
    %34 = arith.cmpf oeq, %30, %33 : vector<10x16xf32>
    %c16_i32_12 = arith.constant 16 : i32
    %35 = vector.broadcast %c16_i32_12 : i32 to vector<10x16xi32>
    %36 = arith.select %34, %0, %35 : vector<10x16xi1>, vector<10x16xi32>
    %cst_13 = arith.constant dense<2147483647> : vector<10xi32>
    %37 = vector.multi_reduction <minsi>, %36, %cst_13 [1] : vector<10x16xi32> to vector<10xi32>
    %38 = vector.shape_cast %37 : vector<10xi32> to vector<10x1xi32>
    %39 = vector.broadcast %38 : vector<10x1xi32> to vector<10x16xi32>
    %40 = arith.cmpi eq, %0, %39 : vector<10x16xi32>
    %cst_14 = arith.constant 0xFF800000 : f32
    %41 = vector.broadcast %cst_14 : f32 to vector<10x16xf32>
    %42 = arith.select %40, %41, %30 : vector<10x16xi1>, vector<10x16xf32>
    %cst_15 = arith.constant dense<0xFF800000> : vector<10xf32>
    %43 = vector.multi_reduction <maximumf>, %42, %cst_15 [1] : vector<10x16xf32> to vector<10xf32>
    %44 = vector.shape_cast %43 : vector<10xf32> to vector<10x1xf32>
    %45 = arith.andi %3, %34 : vector<10x16xi1>
    %c1_i32_16 = arith.constant 1 : i32
    %c0_i32_17 = arith.constant 0 : i32
    %46 = vector.broadcast %c1_i32_16 : i32 to vector<10x16xi32>
    %47 = vector.broadcast %c0_i32_17 : i32 to vector<10x16xi32>
    %48 = arith.select %45, %46, %47 : vector<10x16xi1>, vector<10x16xi32>
    %cst_18 = arith.constant dense<-2147483648> : vector<10xi32>
    %49 = vector.multi_reduction <maxsi>, %48, %cst_18 [1] : vector<10x16xi32> to vector<10xi32>
    %50 = vector.shape_cast %49 : vector<10xi32> to vector<10x1xi32>
    %c0_i32_19 = arith.constant 0 : i32
    %51 = vector.broadcast %c0_i32_19 : i32 to vector<10x1xi32>
    %52 = arith.cmpi sgt, %50, %51 : vector<10x1xi32>
    %53 = arith.subf %32, %44 : vector<10x1xf32>
    %cst_20 = arith.constant 0.000000e+00 : f32
    %54 = vector.broadcast %cst_20 : f32 to vector<10x1xf32>
    %55 = arith.select %52, %53, %54 : vector<10x1xi1>, vector<10x1xf32>
    %c0_21 = arith.constant 0 : index
    %c0_22 = arith.constant 0 : index
    %56 = vector.load %arg4[%c0_21, %c0_22] : memref<10x16xf32, #tpu.memory_space<vmem>>, vector<10x16xf32>
    %cst_23 = arith.constant dense<0xFF800000> : vector<10xf32>
    %57 = vector.multi_reduction <maximumf>, %56, %cst_23 [1] : vector<10x16xf32> to vector<10xf32>
    %58 = vector.shape_cast %57 : vector<10xf32> to vector<10x1xf32>
    %59 = vector.broadcast %58 : vector<10x1xf32> to vector<10x16xf32>
    %60 = arith.cmpf oeq, %56, %59 : vector<10x16xf32>
    %c16_i32_24 = arith.constant 16 : i32
    %61 = vector.broadcast %c16_i32_24 : i32 to vector<10x16xi32>
    %62 = arith.select %60, %0, %61 : vector<10x16xi1>, vector<10x16xi32>
    %cst_25 = arith.constant dense<2147483647> : vector<10xi32>
    %63 = vector.multi_reduction <minsi>, %62, %cst_25 [1] : vector<10x16xi32> to vector<10xi32>
    %64 = vector.shape_cast %63 : vector<10xi32> to vector<10x1xi32>
    %65 = vector.broadcast %64 : vector<10x1xi32> to vector<10x16xi32>
    %66 = arith.cmpi eq, %0, %65 : vector<10x16xi32>
    %cst_26 = arith.constant 0xFF800000 : f32
    %67 = vector.broadcast %cst_26 : f32 to vector<10x16xf32>
    %68 = arith.select %66, %67, %56 : vector<10x16xi1>, vector<10x16xf32>
    %cst_27 = arith.constant dense<0xFF800000> : vector<10xf32>
    %69 = vector.multi_reduction <maximumf>, %68, %cst_27 [1] : vector<10x16xf32> to vector<10xf32>
    %70 = vector.shape_cast %69 : vector<10xf32> to vector<10x1xf32>
    %71 = arith.andi %3, %60 : vector<10x16xi1>
    %c1_i32_28 = arith.constant 1 : i32
    %c0_i32_29 = arith.constant 0 : i32
    %72 = vector.broadcast %c1_i32_28 : i32 to vector<10x16xi32>
    %73 = vector.broadcast %c0_i32_29 : i32 to vector<10x16xi32>
    %74 = arith.select %71, %72, %73 : vector<10x16xi1>, vector<10x16xi32>
    %cst_30 = arith.constant dense<-2147483648> : vector<10xi32>
    %75 = vector.multi_reduction <maxsi>, %74, %cst_30 [1] : vector<10x16xi32> to vector<10xi32>
    %76 = vector.shape_cast %75 : vector<10xi32> to vector<10x1xi32>
    %c0_i32_31 = arith.constant 0 : i32
    %77 = vector.broadcast %c0_i32_31 : i32 to vector<10x1xi32>
    %78 = arith.cmpi sgt, %76, %77 : vector<10x1xi32>
    %79 = arith.subf %58, %70 : vector<10x1xf32>
    %cst_32 = arith.constant 0.000000e+00 : f32
    %80 = vector.broadcast %cst_32 : f32 to vector<10x1xf32>
    %81 = arith.select %78, %79, %80 : vector<10x1xi1>, vector<10x1xf32>
    %c0_33 = arith.constant 0 : index
    %c0_34 = arith.constant 0 : index
    %82 = vector.load %arg5[%c0_33, %c0_34] : memref<10x16xf32, #tpu.memory_space<vmem>>, vector<10x16xf32>
    %cst_35 = arith.constant dense<0xFF800000> : vector<10xf32>
    %83 = vector.multi_reduction <maximumf>, %82, %cst_35 [1] : vector<10x16xf32> to vector<10xf32>
    %84 = vector.shape_cast %83 : vector<10xf32> to vector<10x1xf32>
    %85 = vector.broadcast %84 : vector<10x1xf32> to vector<10x16xf32>
    %86 = arith.cmpf oeq, %82, %85 : vector<10x16xf32>
    %c16_i32_36 = arith.constant 16 : i32
    %87 = vector.broadcast %c16_i32_36 : i32 to vector<10x16xi32>
    %88 = arith.select %86, %0, %87 : vector<10x16xi1>, vector<10x16xi32>
    %cst_37 = arith.constant dense<2147483647> : vector<10xi32>
    %89 = vector.multi_reduction <minsi>, %88, %cst_37 [1] : vector<10x16xi32> to vector<10xi32>
    %90 = vector.shape_cast %89 : vector<10xi32> to vector<10x1xi32>
    %91 = vector.broadcast %90 : vector<10x1xi32> to vector<10x16xi32>
    %92 = arith.cmpi eq, %0, %91 : vector<10x16xi32>
    %cst_38 = arith.constant 0xFF800000 : f32
    %93 = vector.broadcast %cst_38 : f32 to vector<10x16xf32>
    %94 = arith.select %92, %93, %82 : vector<10x16xi1>, vector<10x16xf32>
    %cst_39 = arith.constant dense<0xFF800000> : vector<10xf32>
    %95 = vector.multi_reduction <maximumf>, %94, %cst_39 [1] : vector<10x16xf32> to vector<10xf32>
    %96 = vector.shape_cast %95 : vector<10xf32> to vector<10x1xf32>
    %97 = arith.andi %3, %86 : vector<10x16xi1>
    %c1_i32_40 = arith.constant 1 : i32
    %c0_i32_41 = arith.constant 0 : i32
    %98 = vector.broadcast %c1_i32_40 : i32 to vector<10x16xi32>
    %99 = vector.broadcast %c0_i32_41 : i32 to vector<10x16xi32>
    %100 = arith.select %97, %98, %99 : vector<10x16xi1>, vector<10x16xi32>
    %cst_42 = arith.constant dense<-2147483648> : vector<10xi32>
    %101 = vector.multi_reduction <maxsi>, %100, %cst_42 [1] : vector<10x16xi32> to vector<10xi32>
    %102 = vector.shape_cast %101 : vector<10xi32> to vector<10x1xi32>
    %c0_i32_43 = arith.constant 0 : i32
    %103 = vector.broadcast %c0_i32_43 : i32 to vector<10x1xi32>
    %104 = arith.cmpi sgt, %102, %103 : vector<10x1xi32>
    %105 = arith.subf %84, %96 : vector<10x1xf32>
    %cst_44 = arith.constant 0.000000e+00 : f32
    %106 = vector.broadcast %cst_44 : f32 to vector<10x1xf32>
    %107 = arith.select %104, %105, %106 : vector<10x1xi1>, vector<10x1xf32>
    %c0_45 = arith.constant 0 : index
    %c0_46 = arith.constant 0 : index
    %108 = vector.load %arg6[%c0_45, %c0_46] : memref<10x16xf32, #tpu.memory_space<vmem>>, vector<10x16xf32>
    %cst_47 = arith.constant dense<0xFF800000> : vector<10xf32>
    %109 = vector.multi_reduction <maximumf>, %108, %cst_47 [1] : vector<10x16xf32> to vector<10xf32>
    %110 = vector.shape_cast %109 : vector<10xf32> to vector<10x1xf32>
    %111 = vector.broadcast %110 : vector<10x1xf32> to vector<10x16xf32>
    %112 = arith.cmpf oeq, %108, %111 : vector<10x16xf32>
    %c16_i32_48 = arith.constant 16 : i32
    %113 = vector.broadcast %c16_i32_48 : i32 to vector<10x16xi32>
    %114 = arith.select %112, %0, %113 : vector<10x16xi1>, vector<10x16xi32>
    %cst_49 = arith.constant dense<2147483647> : vector<10xi32>
    %115 = vector.multi_reduction <minsi>, %114, %cst_49 [1] : vector<10x16xi32> to vector<10xi32>
    %116 = vector.shape_cast %115 : vector<10xi32> to vector<10x1xi32>
    %117 = vector.broadcast %116 : vector<10x1xi32> to vector<10x16xi32>
    %118 = arith.cmpi eq, %0, %117 : vector<10x16xi32>
    %cst_50 = arith.constant 0xFF800000 : f32
    %119 = vector.broadcast %cst_50 : f32 to vector<10x16xf32>
    %120 = arith.select %118, %119, %108 : vector<10x16xi1>, vector<10x16xf32>
    %cst_51 = arith.constant dense<0xFF800000> : vector<10xf32>
    %121 = vector.multi_reduction <maximumf>, %120, %cst_51 [1] : vector<10x16xf32> to vector<10xf32>
    %122 = vector.shape_cast %121 : vector<10xf32> to vector<10x1xf32>
    %123 = arith.andi %3, %112 : vector<10x16xi1>
    %c1_i32_52 = arith.constant 1 : i32
    %c0_i32_53 = arith.constant 0 : i32
    %124 = vector.broadcast %c1_i32_52 : i32 to vector<10x16xi32>
    %125 = vector.broadcast %c0_i32_53 : i32 to vector<10x16xi32>
    %126 = arith.select %123, %124, %125 : vector<10x16xi1>, vector<10x16xi32>
    %cst_54 = arith.constant dense<-2147483648> : vector<10xi32>
    %127 = vector.multi_reduction <maxsi>, %126, %cst_54 [1] : vector<10x16xi32> to vector<10xi32>
    %128 = vector.shape_cast %127 : vector<10xi32> to vector<10x1xi32>
    %c0_i32_55 = arith.constant 0 : i32
    %129 = vector.broadcast %c0_i32_55 : i32 to vector<10x1xi32>
    %130 = arith.cmpi sgt, %128, %129 : vector<10x1xi32>
    %131 = arith.subf %110, %122 : vector<10x1xf32>
    %cst_56 = arith.constant 0.000000e+00 : f32
    %132 = vector.broadcast %cst_56 : f32 to vector<10x1xf32>
    %133 = arith.select %130, %131, %132 : vector<10x1xi1>, vector<10x1xf32>
    %c0_57 = arith.constant 0 : index
    %c0_58 = arith.constant 0 : index
    %134 = vector.load %arg7[%c0_57, %c0_58] : memref<10x16xf32, #tpu.memory_space<vmem>>, vector<10x16xf32>
    %cst_59 = arith.constant dense<0xFF800000> : vector<10xf32>
    %135 = vector.multi_reduction <maximumf>, %134, %cst_59 [1] : vector<10x16xf32> to vector<10xf32>
    %136 = vector.shape_cast %135 : vector<10xf32> to vector<10x1xf32>
    %137 = vector.broadcast %136 : vector<10x1xf32> to vector<10x16xf32>
    %138 = arith.cmpf oeq, %134, %137 : vector<10x16xf32>
    %c16_i32_60 = arith.constant 16 : i32
    %139 = vector.broadcast %c16_i32_60 : i32 to vector<10x16xi32>
    %140 = arith.select %138, %0, %139 : vector<10x16xi1>, vector<10x16xi32>
    %cst_61 = arith.constant dense<2147483647> : vector<10xi32>
    %141 = vector.multi_reduction <minsi>, %140, %cst_61 [1] : vector<10x16xi32> to vector<10xi32>
    %142 = vector.shape_cast %141 : vector<10xi32> to vector<10x1xi32>
    %143 = vector.broadcast %142 : vector<10x1xi32> to vector<10x16xi32>
    %144 = arith.cmpi eq, %0, %143 : vector<10x16xi32>
    %cst_62 = arith.constant 0xFF800000 : f32
    %145 = vector.broadcast %cst_62 : f32 to vector<10x16xf32>
    %146 = arith.select %144, %145, %134 : vector<10x16xi1>, vector<10x16xf32>
    %cst_63 = arith.constant dense<0xFF800000> : vector<10xf32>
    %147 = vector.multi_reduction <maximumf>, %146, %cst_63 [1] : vector<10x16xf32> to vector<10xf32>
    %148 = vector.shape_cast %147 : vector<10xf32> to vector<10x1xf32>
    %149 = arith.andi %3, %138 : vector<10x16xi1>
    %c1_i32_64 = arith.constant 1 : i32
    %c0_i32_65 = arith.constant 0 : i32
    %150 = vector.broadcast %c1_i32_64 : i32 to vector<10x16xi32>
    %151 = vector.broadcast %c0_i32_65 : i32 to vector<10x16xi32>
    %152 = arith.select %149, %150, %151 : vector<10x16xi1>, vector<10x16xi32>
    %cst_66 = arith.constant dense<-2147483648> : vector<10xi32>
    %153 = vector.multi_reduction <maxsi>, %152, %cst_66 [1] : vector<10x16xi32> to vector<10xi32>
    %154 = vector.shape_cast %153 : vector<10xi32> to vector<10x1xi32>
    %c0_i32_67 = arith.constant 0 : i32
    %155 = vector.broadcast %c0_i32_67 : i32 to vector<10x1xi32>
    %156 = arith.cmpi sgt, %154, %155 : vector<10x1xi32>
    %157 = arith.subf %136, %148 : vector<10x1xf32>
    %cst_68 = arith.constant 0.000000e+00 : f32
    %158 = vector.broadcast %cst_68 : f32 to vector<10x1xf32>
    %159 = arith.select %156, %157, %158 : vector<10x1xi1>, vector<10x1xf32>
    %c0_69 = arith.constant 0 : index
    %c0_70 = arith.constant 0 : index
    %160 = vector.load %arg8[%c0_69, %c0_70] : memref<10x16xf32, #tpu.memory_space<vmem>>, vector<10x16xf32>
    %cst_71 = arith.constant dense<0xFF800000> : vector<10xf32>
    %161 = vector.multi_reduction <maximumf>, %160, %cst_71 [1] : vector<10x16xf32> to vector<10xf32>
    %162 = vector.shape_cast %161 : vector<10xf32> to vector<10x1xf32>
    %163 = vector.broadcast %162 : vector<10x1xf32> to vector<10x16xf32>
    %164 = arith.cmpf oeq, %160, %163 : vector<10x16xf32>
    %c16_i32_72 = arith.constant 16 : i32
    %165 = vector.broadcast %c16_i32_72 : i32 to vector<10x16xi32>
    %166 = arith.select %164, %0, %165 : vector<10x16xi1>, vector<10x16xi32>
    %cst_73 = arith.constant dense<2147483647> : vector<10xi32>
    %167 = vector.multi_reduction <minsi>, %166, %cst_73 [1] : vector<10x16xi32> to vector<10xi32>
    %168 = vector.shape_cast %167 : vector<10xi32> to vector<10x1xi32>
    %169 = vector.broadcast %168 : vector<10x1xi32> to vector<10x16xi32>
    %170 = arith.cmpi eq, %0, %169 : vector<10x16xi32>
    %cst_74 = arith.constant 0xFF800000 : f32
    %171 = vector.broadcast %cst_74 : f32 to vector<10x16xf32>
    %172 = arith.select %170, %171, %160 : vector<10x16xi1>, vector<10x16xf32>
    %cst_75 = arith.constant dense<0xFF800000> : vector<10xf32>
    %173 = vector.multi_reduction <maximumf>, %172, %cst_75 [1] : vector<10x16xf32> to vector<10xf32>
    %174 = vector.shape_cast %173 : vector<10xf32> to vector<10x1xf32>
    %175 = arith.andi %3, %164 : vector<10x16xi1>
    %c1_i32_76 = arith.constant 1 : i32
    %c0_i32_77 = arith.constant 0 : i32
    %176 = vector.broadcast %c1_i32_76 : i32 to vector<10x16xi32>
    %177 = vector.broadcast %c0_i32_77 : i32 to vector<10x16xi32>
    %178 = arith.select %175, %176, %177 : vector<10x16xi1>, vector<10x16xi32>
    %cst_78 = arith.constant dense<-2147483648> : vector<10xi32>
    %179 = vector.multi_reduction <maxsi>, %178, %cst_78 [1] : vector<10x16xi32> to vector<10xi32>
    %180 = vector.shape_cast %179 : vector<10xi32> to vector<10x1xi32>
    %c0_i32_79 = arith.constant 0 : i32
    %181 = vector.broadcast %c0_i32_79 : i32 to vector<10x1xi32>
    %182 = arith.cmpi sgt, %180, %181 : vector<10x1xi32>
    %183 = arith.subf %162, %174 : vector<10x1xf32>
    %cst_80 = arith.constant 0.000000e+00 : f32
    %184 = vector.broadcast %cst_80 : f32 to vector<10x1xf32>
    %185 = arith.select %182, %183, %184 : vector<10x1xi1>, vector<10x1xf32>
    %c0_81 = arith.constant 0 : index
    %c0_82 = arith.constant 0 : index
    %186 = vector.load %arg9[%c0_81, %c0_82] : memref<10x16xf32, #tpu.memory_space<vmem>>, vector<10x16xf32>
    %cst_83 = arith.constant dense<0xFF800000> : vector<10xf32>
    %187 = vector.multi_reduction <maximumf>, %186, %cst_83 [1] : vector<10x16xf32> to vector<10xf32>
    %188 = vector.shape_cast %187 : vector<10xf32> to vector<10x1xf32>
    %189 = vector.broadcast %188 : vector<10x1xf32> to vector<10x16xf32>
    %190 = arith.cmpf oeq, %186, %189 : vector<10x16xf32>
    %c16_i32_84 = arith.constant 16 : i32
    %191 = vector.broadcast %c16_i32_84 : i32 to vector<10x16xi32>
    %192 = arith.select %190, %0, %191 : vector<10x16xi1>, vector<10x16xi32>
    %cst_85 = arith.constant dense<2147483647> : vector<10xi32>
    %193 = vector.multi_reduction <minsi>, %192, %cst_85 [1] : vector<10x16xi32> to vector<10xi32>
    %194 = vector.shape_cast %193 : vector<10xi32> to vector<10x1xi32>
    %195 = vector.broadcast %194 : vector<10x1xi32> to vector<10x16xi32>
    %196 = arith.cmpi eq, %0, %195 : vector<10x16xi32>
    %cst_86 = arith.constant 0xFF800000 : f32
    %197 = vector.broadcast %cst_86 : f32 to vector<10x16xf32>
    %198 = arith.select %196, %197, %186 : vector<10x16xi1>, vector<10x16xf32>
    %cst_87 = arith.constant dense<0xFF800000> : vector<10xf32>
    %199 = vector.multi_reduction <maximumf>, %198, %cst_87 [1] : vector<10x16xf32> to vector<10xf32>
    %200 = vector.shape_cast %199 : vector<10xf32> to vector<10x1xf32>
    %201 = arith.andi %3, %190 : vector<10x16xi1>
    %c1_i32_88 = arith.constant 1 : i32
    %c0_i32_89 = arith.constant 0 : i32
    %202 = vector.broadcast %c1_i32_88 : i32 to vector<10x16xi32>
    %203 = vector.broadcast %c0_i32_89 : i32 to vector<10x16xi32>
    %204 = arith.select %201, %202, %203 : vector<10x16xi1>, vector<10x16xi32>
    %cst_90 = arith.constant dense<-2147483648> : vector<10xi32>
    %205 = vector.multi_reduction <maxsi>, %204, %cst_90 [1] : vector<10x16xi32> to vector<10xi32>
    %206 = vector.shape_cast %205 : vector<10xi32> to vector<10x1xi32>
    %c0_i32_91 = arith.constant 0 : i32
    %207 = vector.broadcast %c0_i32_91 : i32 to vector<10x1xi32>
    %208 = arith.cmpi sgt, %206, %207 : vector<10x1xi32>
    %209 = arith.subf %188, %200 : vector<10x1xf32>
    %cst_92 = arith.constant 0.000000e+00 : f32
    %210 = vector.broadcast %cst_92 : f32 to vector<10x1xf32>
    %211 = arith.select %208, %209, %210 : vector<10x1xi1>, vector<10x1xf32>
    %212 = tpu.iota {dimensions = array<i32: 1>} : vector<10x8xi32>
    %cst_93 = arith.constant 0.000000e+00 : f32
    %213 = vector.broadcast %cst_93 : f32 to vector<10x8xf32>
    %c0_i32_94 = arith.constant 0 : i32
    %214 = vector.broadcast %c0_i32_94 : i32 to vector<10x8xi32>
    %215 = arith.cmpi eq, %212, %214 : vector<10x8xi32>
    %cst_95 = arith.constant 5.000000e-01 : f32
    %216 = vector.broadcast %cst_95 : f32 to vector<10x1xf32>
    %217 = arith.mulf %29, %216 : vector<10x1xf32>
    %218 = vector.shape_cast %217 : vector<10x1xf32> to vector<10x1xf32>
    %219 = vector.broadcast %218 : vector<10x1xf32> to vector<10x8xf32>
    %220 = arith.select %215, %219, %213 : vector<10x8xi1>, vector<10x8xf32>
    %c1_i32_96 = arith.constant 1 : i32
    %221 = vector.broadcast %c1_i32_96 : i32 to vector<10x8xi32>
    %222 = arith.cmpi eq, %212, %221 : vector<10x8xi32>
    %cst_97 = arith.constant 5.000000e-01 : f32
    %223 = vector.broadcast %cst_97 : f32 to vector<10x1xf32>
    %224 = arith.mulf %55, %223 : vector<10x1xf32>
    %225 = vector.shape_cast %224 : vector<10x1xf32> to vector<10x1xf32>
    %226 = vector.broadcast %225 : vector<10x1xf32> to vector<10x8xf32>
    %227 = arith.select %222, %226, %220 : vector<10x8xi1>, vector<10x8xf32>
    %c2_i32 = arith.constant 2 : i32
    %228 = vector.broadcast %c2_i32 : i32 to vector<10x8xi32>
    %229 = arith.cmpi eq, %212, %228 : vector<10x8xi32>
    %cst_98 = arith.constant 5.000000e-01 : f32
    %230 = vector.broadcast %cst_98 : f32 to vector<10x1xf32>
    %231 = arith.mulf %81, %230 : vector<10x1xf32>
    %232 = vector.shape_cast %231 : vector<10x1xf32> to vector<10x1xf32>
    %233 = vector.broadcast %232 : vector<10x1xf32> to vector<10x8xf32>
    %234 = arith.select %229, %233, %227 : vector<10x8xi1>, vector<10x8xf32>
    %c3_i32 = arith.constant 3 : i32
    %235 = vector.broadcast %c3_i32 : i32 to vector<10x8xi32>
    %236 = arith.cmpi eq, %212, %235 : vector<10x8xi32>
    %cst_99 = arith.constant 5.000000e-01 : f32
    %237 = vector.broadcast %cst_99 : f32 to vector<10x1xf32>
    %238 = arith.mulf %107, %237 : vector<10x1xf32>
    %239 = vector.shape_cast %238 : vector<10x1xf32> to vector<10x1xf32>
    %240 = vector.broadcast %239 : vector<10x1xf32> to vector<10x8xf32>
    %241 = arith.select %236, %240, %234 : vector<10x8xi1>, vector<10x8xf32>
    %c4_i32 = arith.constant 4 : i32
    %242 = vector.broadcast %c4_i32 : i32 to vector<10x8xi32>
    %243 = arith.cmpi eq, %212, %242 : vector<10x8xi32>
    %cst_100 = arith.constant 5.000000e-01 : f32
    %244 = vector.broadcast %cst_100 : f32 to vector<10x1xf32>
    %245 = arith.mulf %133, %244 : vector<10x1xf32>
    %246 = vector.shape_cast %245 : vector<10x1xf32> to vector<10x1xf32>
    %247 = vector.broadcast %246 : vector<10x1xf32> to vector<10x8xf32>
    %248 = arith.select %243, %247, %241 : vector<10x8xi1>, vector<10x8xf32>
    %c5_i32 = arith.constant 5 : i32
    %249 = vector.broadcast %c5_i32 : i32 to vector<10x8xi32>
    %250 = arith.cmpi eq, %212, %249 : vector<10x8xi32>
    %cst_101 = arith.constant 5.000000e-01 : f32
    %251 = vector.broadcast %cst_101 : f32 to vector<10x1xf32>
    %252 = arith.mulf %159, %251 : vector<10x1xf32>
    %253 = vector.shape_cast %252 : vector<10x1xf32> to vector<10x1xf32>
    %254 = vector.broadcast %253 : vector<10x1xf32> to vector<10x8xf32>
    %255 = arith.select %250, %254, %248 : vector<10x8xi1>, vector<10x8xf32>
    %c6_i32 = arith.constant 6 : i32
    %256 = vector.broadcast %c6_i32 : i32 to vector<10x8xi32>
    %257 = arith.cmpi eq, %212, %256 : vector<10x8xi32>
    %cst_102 = arith.constant 5.000000e-01 : f32
    %258 = vector.broadcast %cst_102 : f32 to vector<10x1xf32>
    %259 = arith.mulf %185, %258 : vector<10x1xf32>
    %260 = vector.shape_cast %259 : vector<10x1xf32> to vector<10x1xf32>
    %261 = vector.broadcast %260 : vector<10x1xf32> to vector<10x8xf32>
    %262 = arith.select %257, %261, %255 : vector<10x8xi1>, vector<10x8xf32>
    %c7_i32 = arith.constant 7 : i32
    %263 = vector.broadcast %c7_i32 : i32 to vector<10x8xi32>
    %264 = arith.cmpi eq, %212, %263 : vector<10x8xi32>
    %cst_103 = arith.constant 5.000000e-01 : f32
    %265 = vector.broadcast %cst_103 : f32 to vector<10x1xf32>
    %266 = arith.mulf %211, %265 : vector<10x1xf32>
    %267 = vector.shape_cast %266 : vector<10x1xf32> to vector<10x1xf32>
    %268 = vector.broadcast %267 : vector<10x1xf32> to vector<10x8xf32>
    %269 = arith.select %264, %268, %262 : vector<10x8xi1>, vector<10x8xf32>
    %cst_104 = arith.constant dense<0xFF800000> : vector<10xf32>
    %270 = vector.multi_reduction <maximumf>, %269, %cst_104 [1] : vector<10x8xf32> to vector<10xf32>
    %271 = vector.shape_cast %270 : vector<10xf32> to vector<10x1xf32>
    %272 = vector.broadcast %271 : vector<10x1xf32> to vector<10x8xf32>
    %273 = arith.subf %269, %272 : vector<10x8xf32>
    %274 = math.exp %273 : vector<10x8xf32>
    %cst_105 = arith.constant dense<0.000000e+00> : vector<10xf32>
    %275 = vector.multi_reduction <add>, %274, %cst_105 [1] : vector<10x8xf32> to vector<10xf32>
    %276 = vector.shape_cast %275 : vector<10xf32> to vector<10x1xf32>
    %277 = vector.broadcast %276 : vector<10x1xf32> to vector<10x8xf32>
    %278 = arith.divf %274, %277 : vector<10x8xf32>
    %c0_106 = arith.constant 0 : index
    %c0_107 = arith.constant 0 : index
    %279 = vector.load %arg10[%c0_106, %c0_107] : memref<10x8xf32, #tpu.memory_space<vmem>>, vector<10x8xf32>
    tpu.vector_store %arg10[%c0_106, %c0_107], %278 {strides = array<i32>} : memref<10x8xf32, #tpu.memory_space<vmem>>, vector<10x8xf32>,
    %280 = arith.maximumf %6, %32 : vector<10x1xf32>
    %281 = arith.maximumf %280, %58 : vector<10x1xf32>
    %282 = arith.maximumf %281, %84 : vector<10x1xf32>
    %283 = arith.maximumf %282, %110 : vector<10x1xf32>
    %284 = arith.maximumf %283, %136 : vector<10x1xf32>
    %285 = arith.maximumf %284, %162 : vector<10x1xf32>
    %286 = tpu.iota {dimensions = array<i32: 0>} : vector<10x1xi32>
    %c10_i32 = arith.constant 10 : i32
    %287 = arith.muli %arg0, %c10_i32 : i32
    %c10_i32_108 = arith.constant 10 : i32
    %288 = arith.subi %c10_i32_108, %287 : i32
    %289 = vector.broadcast %288 : i32 to vector<10x1xi32>
    %290 = arith.cmpi slt, %286, %289 : vector<10x1xi32>
    %cst_109 = arith.constant 0xFF800000 : f32
    %291 = vector.broadcast %cst_109 : f32 to vector<10x1xf32>
    %292 = arith.select %290, %285, %291 : vector<10x1xi1>, vector<10x1xf32>
    %cst_110 = arith.constant dense<0xFF800000> : vector<1xf32>
    %293 = vector.multi_reduction <maximumf>, %292, %cst_110 [0] : vector<10x1xf32> to vector<1xf32>
    %294 = vector.shape_cast %293 : vector<1xf32> to vector<1x1xf32>
    %295 = vector.shape_cast %294 : vector<1x1xf32> to vector<1x1xf32>
    %296 = vector.broadcast %295 : vector<1x1xf32> to vector<8x128xf32>
    %c0_111 = arith.constant 0 : index
    %c0_112 = arith.constant 0 : index
    %297 = vector.load %arg11[%c0_111, %c0_112] : memref<8x128xf32, #tpu.memory_space<vmem>>, vector<8x128xf32>
    tpu.vector_store %arg11[%c0_111, %c0_112], %296 {strides = array<i32>} : memref<8x128xf32, #tpu.memory_space<vmem>>, vector<8x128xf32>,
    return
  }
  func.func @transform_0(%arg0: i32) -> (i32, i32) {
    %c0_i32 = arith.constant 0 : i32
    %c0_i32_0 = arith.constant 0 : i32
    return %arg0, %c0_i32 : i32, i32
  }
  func.func @transform_1(%arg0: i32) -> (i32, i32) {
    %c0_i32 = arith.constant 0 : i32
    %c0_i32_0 = arith.constant 0 : i32
    return %arg0, %c0_i32 : i32, i32
  }
  func.func @transform_2(%arg0: i32) -> (i32, i32) {
    %c0_i32 = arith.constant 0 : i32
    %c0_i32_0 = arith.constant 0 : i32
    return %arg0, %c0_i32 : i32, i32
  }
  func.func @transform_3(%arg0: i32) -> (i32, i32) {
    %c0_i32 = arith.constant 0 : i32
    %c0_i32_0 = arith.constant 0 : i32
    return %arg0, %c0_i32 : i32, i32
  }
  func.func @transform_4(%arg0: i32) -> (i32, i32) {
    %c0_i32 = arith.constant 0 : i32
    %c0_i32_0 = arith.constant 0 : i32
    return %arg0, %c0_i32 : i32, i32
  }
  func.func @transform_5(%arg0: i32) -> (i32, i32) {
    %c0_i32 = arith.constant 0 : i32
    %c0_i32_0 = arith.constant 0 : i32
    return %arg0, %c0_i32 : i32, i32
  }
  func.func @transform_6(%arg0: i32) -> (i32, i32) {
    %c0_i32 = arith.constant 0 : i32
    %c0_i32_0 = arith.constant 0 : i32
    return %arg0, %c0_i32 : i32, i32
  }
  func.func @transform_7(%arg0: i32) -> (i32, i32) {
    %c0_i32 = arith.constant 0 : i32
    %c0_i32_0 = arith.constant 0 : i32
    return %arg0, %c0_i32 : i32, i32
  }
  func.func @transform_8(%arg0: i32) -> (i32, i32) {
    %c0_i32 = arith.constant 0 : i32
    %c0_i32_0 = arith.constant 0 : i32
    return %arg0, %c0_i32 : i32, i32
  }
  func.func @transform_9(%arg0: i32) -> (i32, i32) {
    %c0_i32 = arith.constant 0 : i32
    %c0_i32_0 = arith.constant 0 : i32
    return %arg0, %c0_i32 : i32, i32
  }
  func.func @transform_10(%arg0: i32) -> (i32, i32) {
    %c0_i32 = arith.constant 0 : i32
    %c0_i32_0 = arith.constant 0 : i32
    return %arg0, %c0_i32 : i32, i32
  }
}

</mosaic_0001>

<bundles_post_ra>
// kernel: tpu_custom_call.1
= control target key start
LH: loop header
LB: loop body
LE: loop exit
PB: predicated region body
PF: predicated region fallthrough
CT: control target
= control target key end

     0   :  { %16 = vsyncpa [#allocation3], 0  ;;  %s2326_s0 = inlined_call_operand.vmem [shape: s32[10,1], index: 0, kind: input, shape index: {}]   ;;  %s2327_s1 = inlined_call_operand.vmem [shape: f32[10,16], index: 1, kind: input, shape index: {}]   ;;  %s2328_s2 = inlined_call_operand.hbm [shape: f32[10,16], index: 2, kind: input, shape index: {}]   ;;  %s2329_s3 = inlined_call_operand.hbm [shape: f32[10,16], index: 3, kind: input, shape index: {}]   ;;  %s2330_s4 = inlined_call_operand.vmem [shape: f32[10,16], index: 4, kind: input, shape index: {}]   ;;  %s2331_s5 = inlined_call_operand.hbm [shape: f32[10,16], index: 5, kind: input, shape index: {}]   ;;  %s2332_s6 = inlined_call_operand.hbm [shape: f32[10,16], index: 6, kind: input, shape index: {}]   ;;  %s2333_s7 = inlined_call_operand.hbm [shape: f32[10,16], index: 7, kind: input, shape index: {}]   ;;  %s2334_s8 = inlined_call_operand.hbm [shape: f32[10,16], index: 8, kind: input, shape index: {}]   ;;  %s2335_s9 = inlined_call_operand.vmem [shape: f32[10,8], index: 9, kind: output, shape index: {0}]   ;;  %s2336_s10 = inlined_call_operand.hbm [shape: f32[8,128], index: 10, kind: output, shape index: {1}]  }
   0x1   :  { %17 = vsyncpa [#allocation6], 0 }
   0x2   :  { %18 = vsyncpa [#allocation9], 0 }
   0x3   :  { %19 = vsyncpa [#allocation12], 0 }
   0x4   :  { %20 = vsyncpa [#allocation4], 0  ;;  %s1187_s13 = smov [#allocation5]   ;;  %s1188_s15 = smov [#allocation8]  }
   0x5   :  { %s42_s14 = sshll.u32 %s1187_s13, 4  ;;  %s68_s16 = sshll.u32 %s1188_s15, 4  ;;  %s43_s14 = int_to_ptr.vmem [resolvable:$true] %s42_s14  ;;  %s1252_s16 = int_to_ptr.vmem [resolvable:$true] %s68_s16 }
   0x6   :  { %s1023_s19 = scalar_lea.hbm %s2329_s3, 256 }
   0x7   :  { %p1024_p0 = scmp.ne.s32.totalorder %s2329_s3, %s1023_s19  ;;  %p1027_p1 = scmp.lt.u32.totalorder %s1023_s19, %s2329_s3 }
   0x9   :  { %p1029_p2 = pnand %p1027_p1, %p1024_p0 }
   0xb   :  { %1032 = shalt.err (!%p1029_p2)
}
   0xc   :  { %s1033_s24 = scalar_lea.vmem %s43_s14, 256  ;;  %p1038_p4 = scmp.lt.s32.totalorder %s43_s14, %s43_s14 }
   0xd   :  { %p1034_p3 = scmp.ne.s32.totalorder %s43_s14, %s1033_s24  ;;  %p1039_p5 = scmp.lt.s32.totalorder %s1033_s24, %s1033_s24 }
   0xf   :  { %p1040_p6 = por %p1039_p5, %p1038_p4 }
  0x11   :  { %p1041_p7 = pnand %p1040_p6, %p1034_p3 }
  0x13   :  { %1044 = shalt.err (!%p1041_p7)
}
  0x14   :  { %s1189_s25 = smov 128   ;;  %s1190_s26 = smov 8  }
  0x15   :  { %48 = dma.hbm_to_vmem [thread:$0]  %s2329_s3, 256, %s43_s14, [#allocation6], %s1189_s25, %s1189_s25, %s1190_s26  }
  0x16   :  { %s1045_s11 = scalar_lea.hbm %s2332_s6, 256 }
  0x17   :  { %p1046_p8 = scmp.ne.s32.totalorder %s2332_s6, %s1045_s11  ;;  %p1049_p9 = scmp.lt.u32.totalorder %s1045_s11, %s2332_s6 }
  0x19   :  { %p1051_p10 = pnand %p1049_p9, %p1046_p8 }
  0x1b   :  { %1054 = shalt.err (!%p1051_p10)
}
  0x1c   :  { %s1055_s18 = scalar_lea.vmem %s1252_s16, 256  ;;  %p1060_p12 = scmp.lt.s32.totalorder %s1252_s16, %s1252_s16 }
  0x1d   :  { %p1056_p11 = scmp.ne.s32.totalorder %s1252_s16, %s1055_s18  ;;  %p1061_p13 = scmp.lt.s32.totalorder %s1055_s18, %s1055_s18 }
  0x1f   :  { %p1062_p0 = por %p1061_p13, %p1060_p12 }
  0x21   :  { %p1063_p1 = pnand %p1062_p0, %p1056_p11 }
  0x23   :  { %1066 = shalt.err (!%p1063_p1)
}
  0x24   :  { %74 = dma.hbm_to_vmem [thread:$0]  %s2332_s6, 256, %s1252_s16, [#allocation9], %s1189_s25, %s1189_s25, %s1190_s26  }
  0x25   :  { %s1191_s19 = smov [#allocation2]   ;;  %s1192_s21 = smov [#allocation7]  }
  0x26   :  { %s30_s20 = sshll.u32 %s1191_s19, 4  ;;  %s56_s22 = sshll.u32 %s1192_s21, 4  ;;  %s31_s20 = int_to_ptr.vmem [resolvable:$true] %s30_s20  ;;  %s1289_s22 = int_to_ptr.vmem [resolvable:$true] %s56_s22 }
  0x27   :  { %s1067_s27 = scalar_lea.hbm %s2328_s2, 256 }
  0x28   :  { %p1068_p2 = scmp.ne.s32.totalorder %s2328_s2, %s1067_s27  ;;  %p1071_p3 = scmp.lt.u32.totalorder %s1067_s27, %s2328_s2 }
  0x2a   :  { %p1073_p4 = pnand %p1071_p3, %p1068_p2 }
  0x2c   :  { %1076 = shalt.err (!%p1073_p4)
}
  0x2d   :  { %s1077_s6 = scalar_lea.vmem %s31_s20, 256  ;;  %p1082_p6 = scmp.lt.s32.totalorder %s31_s20, %s31_s20 }
  0x2e   :  { %p1078_p5 = scmp.ne.s32.totalorder %s31_s20, %s1077_s6  ;;  %p1083_p7 = scmp.lt.s32.totalorder %s1077_s6, %s1077_s6 }
  0x30   :  { %p1084_p8 = por %p1083_p7, %p1082_p6 }
  0x32   :  { %p1085_p9 = pnand %p1084_p8, %p1078_p5 }
  0x34   :  { %1088 = shalt.err (!%p1085_p9)
}
  0x35   :  { %36 = dma.hbm_to_vmem [thread:$0]  %s2328_s2, 256, %s31_s20, [#allocation3], %s1189_s25, %s1189_s25, %s1190_s26  }
  0x36   :  { %s1089_s17 = scalar_lea.hbm %s2331_s5, 256 }
  0x37   :  { %p1090_p10 = scmp.ne.s32.totalorder %s2331_s5, %s1089_s17  ;;  %p1093_p11 = scmp.lt.u32.totalorder %s1089_s17, %s2331_s5 }
  0x39   :  { %p1095_p12 = pnand %p1093_p11, %p1090_p10 }
  0x3b   :  { %1098 = shalt.err (!%p1095_p12)
}
  0x3c   :  { %s1099_s21 = scalar_lea.vmem %s1289_s22, 256  ;;  %p1104_p0 = scmp.lt.s32.totalorder %s1289_s22, %s1289_s22 }
  0x3d   :  { %p1100_p13 = scmp.ne.s32.totalorder %s1289_s22, %s1099_s21  ;;  %p1105_p1 = scmp.lt.s32.totalorder %s1099_s21, %s1099_s21 }
  0x3f   :  { %p1106_p2 = por %p1105_p1, %p1104_p0 }
  0x41   :  { %p1107_p3 = pnand %p1106_p2, %p1100_p13 }
  0x43   :  { %1110 = shalt.err (!%p1107_p3)
}
  0x44   :  { %62 = dma.hbm_to_vmem [thread:$0]  %s2331_s5, 256, %s1289_s22, [#allocation6], %s1189_s25, %s1189_s25, %s1190_s26  }
  0x45   :  { %s1193_s23 = smov [#allocation10]   ;;  %s1194_s27 = smov [#allocation11]  }
  0x46   :  { %s80_s24 = sshll.u32 %s1193_s23, 4  ;;  %s92_s28 = sshll.u32 %s1194_s27, 4  ;;  %s81_s24 = int_to_ptr.vmem [resolvable:$true] %s80_s24  ;;  %s1326_s28 = int_to_ptr.vmem [resolvable:$true] %s92_s28 }
  0x47   :  { %s1111_s11 = scalar_lea.hbm %s2333_s7, 256 }
  0x48   :  { %p1112_p4 = scmp.ne.s32.totalorder %s2333_s7, %s1111_s11  ;;  %p1115_p5 = scmp.lt.u32.totalorder %s1111_s11, %s2333_s7 }
  0x4a   :  { %p1117_p6 = pnand %p1115_p5, %p1112_p4 }
  0x4c   :  { %1120 = shalt.err (!%p1117_p6)
}
  0x4d   :  { %s1121_s5 = scalar_lea.vmem %s81_s24, 256  ;;  %p1126_p8 = scmp.lt.s32.totalorder %s81_s24, %s81_s24 }
  0x4e   :  { %p1122_p7 = scmp.ne.s32.totalorder %s81_s24, %s1121_s5  ;;  %p1127_p9 = scmp.lt.s32.totalorder %s1121_s5, %s1121_s5 }
  0x50   :  { %p1128_p10 = por %p1127_p9, %p1126_p8 }
  0x52   :  { %p1129_p11 = pnand %p1128_p10, %p1122_p7 }
  0x54   :  { %1132 = shalt.err (!%p1129_p11)
}
  0x55   :  { %86 = dma.hbm_to_vmem [thread:$0]  %s2333_s7, 256, %s81_s24, [#allocation9], %s1189_s25, %s1189_s25, %s1190_s26  }
  0x56   :  { %s1133_s3 = scalar_lea.hbm %s2334_s8, 256 }
  0x57   :  { %p1134_p12 = scmp.ne.s32.totalorder %s2334_s8, %s1133_s3  ;;  %p1137_p13 = scmp.lt.u32.totalorder %s1133_s3, %s2334_s8 }
  0x59   :  { %p1139_p0 = pnand %p1137_p13, %p1134_p12 }
  0x5b   :  { %1142 = shalt.err (!%p1139_p0)
}
  0x5c   :  { %s1143_s20 = scalar_lea.vmem %s1326_s28, 256  ;;  %p1148_p2 = scmp.lt.s32.totalorder %s1326_s28, %s1326_s28 }
  0x5d   :  { %p1144_p1 = scmp.ne.s32.totalorder %s1326_s28, %s1143_s20  ;;  %p1149_p3 = scmp.lt.s32.totalorder %s1143_s20, %s1143_s20 }
  0x5f   :  { %p1150_p4 = por %p1149_p3, %p1148_p2 }
  0x61   :  { %p1151_p5 = pnand %p1150_p4, %p1144_p1 }
  0x63   :  { %1154 = shalt.err (!%p1151_p5)
}
  0x64   :  { %98 = dma.hbm_to_vmem [thread:$0]  %s2334_s8, 256, %s1326_s28, [#allocation12], %s1189_s25, %s1189_s25, %s1190_s26  }
  0x65   :  { %1177 = dma.done.wait [#allocation3], 256  }
  0x66   :  { %1178 = vsyncadd [#allocation3], 4294967040 }
  0x67   :  { %1179 = dma.done.wait [#allocation6], 512  }
  0x68   :  { %1180 = vsyncadd [#allocation6], 4294966784 }
  0x69   :  { %1181 = dma.done.wait [#allocation9], 512  }
  0x6a   :  { %1182 = vsyncadd [#allocation9], 4294966784 }
  0x6b   :  { %1183 = dma.done.wait [#allocation12], 256  }
  0x6c   :  { %1184 = vsyncadd [#allocation12], 4294967040  ;;  %v2337_v0 = vmov 0   ;;  %vm131_vm0 = vcmask 130048   ;;  %v1365_v1 = vld [vmem:[#allocation2] sm:$0xff]  ;;  %v1370_v2 = vld [vmem:[%s2327_s1] sm:$0xff]  ;;  %v117_v35 = vlaneseq }
  0x6d   :  { %998 = vset.pattern.permute.xlu1 %v2337_v0  ;;  %997 = vset.pattern.permute.xlu0 %v2337_v0  ;;  %vm135_vm1 = vcmask 123904   ;;  %v1372_v3 = vld [vmem:[#allocation2 + $0x8] sm:$0x3]  ;;  %v225_v4 = vsel %vm131_vm0, %v1365_v1, -inf  ;;  %v132_v5 = vsel %vm131_vm0, %v1370_v2, -inf  ;;  %v1389_v10 = vld [vmem:[#allocation5] sm:$0xff] }
  0x6e   :  { %v1381_v6 = vld [vmem:[%s2327_s1 + $0x8] sm:$0x3]  ;;  %226 = vmax.xlane.f32.xlu1 %v225_v4  ;;  %133 = vmax.xlane.f32.xlu0 %v132_v5  ;;  %v228_v7 = vsel %vm135_vm1, %v1372_v3, -inf  ;;  %v317_v12 = vsel %vm131_vm0, %v1389_v10, -inf  ;;  %v1403_v14 = vld [vmem:[%s2330_s4] sm:$0xff]  ;;  %v1411_v18 = vld [vmem:[#allocation7] sm:$0xff] }
  0x6f   :  { %v136_v8 = vsel %vm135_vm1, %v1381_v6, -inf  ;;  %v1387_v9 = vld [vmem:[#allocation5 + $0x8] sm:$0x3]  ;;  %v409_v16 = vsel %vm131_vm0, %v1403_v14, -inf  ;;  %v1409_v17 = vld [vmem:[#allocation7 + $0x8] sm:$0x3] }
  0x70   :  { %v320_v11 = vsel %vm135_vm1, %v1387_v9, -inf  ;;  %v1398_v13 = vld [vmem:[%s2330_s4 + $0x8] sm:$0x3]  ;;  %v504_v19 = vsel %vm135_vm1, %v1409_v17, -inf  ;;  %v501_v20 = vsel %vm131_vm0, %v1411_v18, -inf  ;;  %v1419_v22 = vld [vmem:[#allocation8] sm:$0xff] }
  0x71   :  { %v412_v15 = vsel %vm135_vm1, %v1398_v13, -inf  ;;  %v1417_v21 = vld [vmem:[#allocation8 + $0x8] sm:$0x3]  ;;  %v593_v24 = vsel %vm131_vm0, %v1419_v22, -inf  ;;  %v1425_v25 = vld [vmem:[#allocation10 + $0x8] sm:$0x3] }
  0x72   :  { %229 = vmax.xlane.f32.xlu1 %v228_v7  ;;  %137 = vmax.xlane.f32.xlu0 %v136_v8  ;;  %v596_v23 = vsel %vm135_vm1, %v1417_v21, -inf  ;;  %v1427_v26 = vld [vmem:[#allocation10] sm:$0xff]  ;;  %v688_v27 = vsel %vm135_vm1, %v1425_v25, -inf  ;;  %v1433_v29 = vld [vmem:[#allocation11 + $0x8] sm:$0x3]  ;;  %v1435_v30 = vld [vmem:[#allocation11] sm:$0xff] }
  0x73   :  { %v685_v28 = vsel %vm131_vm0, %v1427_v26, -inf  ;;  %v780_v31 = vsel %vm135_vm1, %v1433_v29, -inf  ;;  %v777_v32 = vsel %vm131_vm0, %v1435_v30, -inf  ;;  %v120_v33 = vld [vmem:[%s2326_s0 + $0x8] sm:$0x3]  ;;  %v119_v34 = vld [vmem:[%s2326_s0] sm:$0xff] }
  0x74   :  { %v1448_v36 = vand.u32 127, %v117_v35 }
  0x76   :  { %321 = vmax.xlane.f32.xlu1 %v320_v11  ;;  %318 = vmax.xlane.f32.xlu0 %v317_v12  ;;  %2374 = vst [vmem:[#allocation19_spill] sm:$0xff] %v1448_v36 }
  0x7a   :  { %413 = vmax.xlane.f32.xlu1 %v412_v15  ;;  %410 = vmax.xlane.f32.xlu0 %v409_v16 }
  0x7e   :  { %505 = vmax.xlane.f32.xlu1 %v504_v19  ;;  %502 = vmax.xlane.f32.xlu0 %v501_v20 }
  0x82   :  { %597 = vmax.xlane.f32.xlu1 %v596_v23  ;;  %594 = vmax.xlane.f32.xlu0 %v593_v24 }
  0x86   :  { %689 = vmax.xlane.f32.xlu1 %v688_v27  ;;  %686 = vmax.xlane.f32.xlu0 %v685_v28 }
  0x8a   :  { %781 = vmax.xlane.f32.xlu1 %v780_v31  ;;  %778 = vmax.xlane.f32.xlu0 %v777_v32 }
  0x9b   :  { %125 = vperm.xlu1 %998, %v120_v33  }
  0xa0   :  { %122 = vperm.xlu0 %997, %v119_v34  }
  0xfb   :  { %v1450_v37 = vpop.xlane.xlu1 %226  ;;  %v1452_v38 = vpop.xlane.xlu0 %133 }
  0xfc   :  { %2375 = vst [vmem:[#allocation20_spill] sm:$0xff] %v1450_v37  ;;  %2376 = vst [vmem:[#allocation21_spill] sm:$0xff] %v1452_v38  ;;  %vm139_vm2 = vcmp.eq.f32.partialorder %v1370_v2, %v1452_v38  ;;  %vm231_vm3 = vcmp.eq.f32.partialorder %v1365_v1, %v1450_v37 }
  0xfd   :  { %v141_v39 = vsel %vm139_vm2, %v1448_v36, 16  ;;  %v233_v40 = vsel %vm231_vm3, %v1448_v36, 16 }
  0xfe   :  { %v1467_v41 = vsel %vm131_vm0, %v141_v39, 2147483647  ;;  %v1470_v42 = vsel %vm131_vm0, %v233_v40, 2147483647 }
  0xff   :  { %v1472_v43 = vpop.xlane.xlu1 %229  ;;  %v1474_v44 = vpop.xlane.xlu0 %137  ;;  %v145_v45 = vshra.s32 %v1467_v41, 16  ;;  %v237_v46 = vshra.s32 %v1470_v42, 16 }
 0x100   :  { %2377 = vst [vmem:[#allocation22_spill] sm:$0xff] %v1472_v43  ;;  %2378 = vst [vmem:[#allocation23_spill] sm:$0xff] %v1474_v44  ;;  %vm140_vm4 = vcmp.eq.f32.partialorder %v1381_v6, %v1474_v44  ;;  %vm232_vm5 = vcmp.eq.f32.partialorder %v1372_v3, %v1472_v43 }
 0x101   :  { %v1482_v47 = vcvt.s32.f32 %v145_v45  ;;  %v142_v48 = vsel %vm140_vm4, %v1448_v36, 16  ;;  %v234_v49 = vsel %vm232_vm5, %v1448_v36, 16  ;;  %v1504_v55 = vcvt.s32.f32 %v237_v46 }
 0x102   :  { %v1493_v50 = vsel %vm135_vm1, %v142_v48, 2147483647  ;;  %v1496_v51 = vsel %vm135_vm1, %v234_v49, 2147483647  ;;  %v934_v48 = vmax.f32 %v1474_v44, %v1472_v43 }
 0x103   :  { %v1498_v52 = vpop.xlane.xlu1 %321  ;;  %v1500_v53 = vpop.xlane.xlu0 %318  ;;  %148 = vmin.xlane.f32.xlu0 %v1482_v47  ;;  %v160_v54 = vshra.s32 %v1493_v50, 16  ;;  %v252_v56 = vshra.s32 %v1496_v51, 16 }
 0x104   :  { %2379 = vst [vmem:[#allocation24_spill] sm:$0xff] %v1498_v52  ;;  %2380 = vst [vmem:[#allocation25_spill] sm:$0xff] %v1500_v53  ;;  %vm323_vm6 = vcmp.eq.f32.partialorder %v1389_v10, %v1500_v53  ;;  %vm324_vm7 = vcmp.eq.f32.partialorder %v1387_v9, %v1498_v52 }
 0x105   :  { %v1511_v57 = vcvt.s32.f32 %v160_v54  ;;  %v325_v58 = vsel %vm323_vm6, %v1448_v36, 16  ;;  %v326_v59 = vsel %vm324_vm7, %v1448_v36, 16  ;;  %v1533_v4 = vcvt.s32.f32 %v252_v56 }
 0x106   :  { %v1522_v60 = vsel %vm131_vm0, %v325_v58, 2147483647  ;;  %v1525_v61 = vsel %vm135_vm1, %v326_v59, 2147483647  ;;  %v936_v54 = vmax.f32 %v934_v48, %v1498_v52  ;;  %v236_v52 = vand.u32 65535, %v1470_v42 }
 0x107   :  { %v1527_v62 = vpop.xlane.xlu1 %413  ;;  %v1529_v63 = vpop.xlane.xlu0 %410  ;;  %163 = vmin.xlane.f32.xlu1 %v1511_v57  ;;  %240 = vmin.xlane.f32.xlu0 %v1504_v55  ;;  %v329_v5 = vshra.s32 %v1522_v60, 16  ;;  %v344_v7 = vshra.s32 %v1525_v61, 16 }
 0x108   :  { %2381 = vst [vmem:[#allocation26_spill] sm:$0xff] %v1527_v62  ;;  %2382 = vst [vmem:[#allocation27_spill] sm:$0xff] %v1529_v63  ;;  %vm415_vm8 = vcmp.eq.f32.partialorder %v1403_v14, %v1529_v63  ;;  %vm2348_vm9 = vcmp.eq.f32.partialorder %v1398_v13, %v1527_v62 }
 0x109   :  { %v1541_v8 = vcvt.s32.f32 %v329_v5  ;;  %v418_v11 = vsel %vm2348_vm9, %v1448_v36, 16  ;;  %v417_v12 = vsel %vm415_vm8, %v1448_v36, 16  ;;  %v1563_v23 = vcvt.s32.f32 %v344_v7 }
 0x10a   :  { %v1552_v15 = vsel %vm135_vm1, %v418_v11, 2147483647  ;;  %v1555_v16 = vsel %vm131_vm0, %v417_v12, 2147483647  ;;  %v946_v7 = vshrl.u32 %v117_v35, 7  ;;  %v938_v12 = vmax.f32 %v936_v54, %v1527_v62 }
 0x10b   :  { %v1557_v19 = vpop.xlane.xlu1 %505  ;;  %v1559_v20 = vpop.xlane.xlu0 %502  ;;  %255 = vmin.xlane.f32.xlu1 %v1533_v4  ;;  %332 = vmin.xlane.f32.xlu0 %v1541_v8  ;;  %v436_v24 = vshra.s32 %v1552_v15, 16  ;;  %v421_v27 = vshra.s32 %v1555_v16, 16  ;;  %vm955_vm9 = vcmask 1041408  }
 0x10c   :  { %2383 = vst [vmem:[#allocation28_spill] sm:$0xff] %v1557_v19  ;;  %2384 = vst [vmem:[#allocation29_spill] sm:$0xff] %v1559_v20  ;;  %vm507_vm10 = vcmp.eq.f32.partialorder %v1411_v18, %v1559_v20  ;;  %vm2344_vm11 = vcmp.eq.f32.partialorder %v1409_v17, %v1557_v19  ;;  %v947_v48 = vadd.s32 8, %v946_v7 }
 0x10d   :  { %v1571_v28 = vcvt.s32.f32 %v436_v24  ;;  %v509_v31 = vsel %vm507_vm10, %v1448_v36, 16  ;;  %v510_v32 = vsel %vm2344_vm11, %v1448_v36, 16  ;;  %v1590_v40 = vcvt.s32.f32 %v421_v27 }
 0x10e   :  { %v1582_v33 = vsel %vm131_vm0, %v509_v31, 2147483647  ;;  %v1596_v46 = vsel %vm135_vm1, %v510_v32, 2147483647  ;;  %v940_v27 = vmax.f32 %v938_v12, %v1557_v19  ;;  %vm952_vm11 = vcmp.lt.s32.totalorder %v947_v48, 10 }
 0x10f   :  { %2385 = vst [vmem:[#allocation30_spill] sm:$0xff] %v1582_v33  ;;  %v1584_v34 = vpop.xlane.xlu1 %597  ;;  %v1586_v39 = vpop.xlane.xlu0 %594  ;;  %347 = vmin.xlane.f32.xlu1 %v1563_v23  ;;  %439 = vmin.xlane.f32.xlu0 %v1571_v28  ;;  %2388 = vst [vmem:[#allocation33_spill] sm:$0xff] %v1590_v40  ;;  %v513_v45 = vshra.s32 %v1582_v33, 16  ;;  %v528_v5 = vshra.s32 %v1596_v46, 16 }
 0x110   :  { %2386 = vst [vmem:[#allocation31_spill] sm:$0xff] %v1584_v34  ;;  %2387 = vst [vmem:[#allocation32_spill] sm:$0xff] %v1586_v39  ;;  %vm2351_vm12 = vcmp.eq.f32.partialorder %v1419_v22, %v1586_v39  ;;  %vm2339_vm13 = vcmp.eq.f32.partialorder %v1417_v21, %v1584_v34  ;;  %v942_v12 = vmax.f32 %v940_v27, %v1584_v34 }
 0x111   :  { %2389 = vst [vmem:[#allocation34_spill] sm:$0xff] %v1596_v46  ;;  %v601_v49 = vsel %vm2351_vm12, %v1448_v36, 16  ;;  %v1612_v59 = vcvt.s32.f32 %v513_v45  ;;  %v602_v24 = vsel %vm2339_vm13, %v1448_v36, 16  ;;  %v1630_v35 = vcvt.s32.f32 %v528_v5 }
 0x112   :  { %v1617_v11 = vsel %vm131_vm0, %v601_v49, 2147483647  ;;  %v933_v45 = vmax.f32 %v1452_v38, %v1450_v37  ;;  %v1640_v54 = vsel %vm135_vm1, %v602_v24, 2147483647 }
 0x113   :  { %v1607_v56 = vpop.xlane.xlu1 %689  ;;  %v1609_v58 = vpop.xlane.xlu0 %686  ;;  %424 = vmin.xlane.f32.xlu1 %v1590_v40  ;;  %2392 = vst [vmem:[#allocation37_spill] sm:$0xff] %v1612_v59  ;;  %2393 = vst [vmem:[#allocation38_spill] sm:$0xff] %v1617_v11  ;;  %v605_v32 = vshra.s32 %v1617_v11, 16  ;;  %v620_v46 = vshra.s32 %v1640_v54, 16 }
 0x114   :  { %2390 = vst [vmem:[#allocation35_spill] sm:$0xff] %v1607_v56  ;;  %2391 = vst [vmem:[#allocation36_spill] sm:$0xff] %v1609_v58  ;;  %vm2346_vm14 = vcmp.eq.f32.partialorder %v1427_v26, %v1609_v58  ;;  %v935_v0 = vmax.f32 %v933_v45, %v1500_v53  ;;  %vm2349_vm13 = vcmp.eq.f32.partialorder %v1425_v25, %v1607_v56 }
 0x115   :  { %2396 = vst [vmem:[#allocation41_spill] sm:$0xff] %v1640_v54  ;;  %v693_v7 = vsel %vm2346_vm14, %v1448_v36, 16  ;;  %v944_v27 = vmax.f32 %v942_v12, %v1607_v56  ;;  %v1659_v11 = vcvt.s32.f32 %v605_v32  ;;  %v694_v12 = vsel %vm2349_vm13, %v1448_v36, 16 }
 0x116   :  { %v937_v40 = vmax.f32 %v935_v0, %v1529_v63  ;;  %v1665_v45 = vsel %vm131_vm0, %v693_v7, 2147483647  ;;  %v1688_v54 = vsel %vm135_vm1, %v694_v12, 2147483647 }
 0x117   :  { %v1627_v31 = vpop.xlane.xlu0 %778  ;;  %516 = vmin.xlane.f32.xlu1 %v1612_v59  ;;  %v1635_v49 = vpop.xlane.xlu1 %781  ;;  %v697_v48 = vshra.s32 %v1665_v45, 16  ;;  %v712_v38 = vshra.s32 %v1688_v54, 16 }
 0x118   :  { %2394 = vst [vmem:[#allocation39_spill] sm:$0xff] %v1627_v31  ;;  %2395 = vst [vmem:[#allocation40_spill] sm:$0xff] %v1635_v49  ;;  %vm783_vm15 = vcmp.eq.f32.partialorder %v1435_v30, %v1627_v31  ;;  %v939_v32 = vmax.f32 %v937_v40, %v1559_v20  ;;  %vm2353_vm14 = vcmp.eq.f32.partialorder %v1433_v29, %v1635_v49 }
 0x119   :  { %v785_v5 = vsel %vm783_vm15, %v1448_v36, 16  ;;  %v1746_v53 = vcvt.s32.f32 %v712_v38 }
 0x11a   :  { %v1655_v24 = vsel %vm131_vm0, %v785_v5, 2147483647  ;;  %v941_v7 = vmax.f32 %v939_v32, %v1586_v39 }
 0x11b   :  { %2397 = vst [vmem:[#allocation42_spill] sm:$0xff] %v1655_v24  ;;  %531 = vmin.xlane.f32.xlu1 %v1630_v35  ;;  %v789_v59 = vshra.s32 %v1655_v24, 16  ;;  %v126_v5 = vpop.permute.xlu1 %125  ;;  %v954_v24 = vsel %vm952_vm11, %v944_v27, -inf  ;;  %v786_v27 = vsel %vm2353_vm14, %v1448_v36, 16 }
 0x11c   :  { %vm1695_vm11 = vcmp.eq.s32.totalorder %v1448_v36, %v126_v5  ;;  %v956_v32 = vsel %vm955_vm9, %v954_v24, -inf  ;;  %v943_v12 = vmax.f32 %v941_v7, %v1609_v58  ;;  %v1712_v5 = vcvt.s32.f32 %v697_v48 }
 0x11d   :  { %v1667_v33 = vcvt.s32.f32 %v789_v59  ;;  %v1678_v59 = vcvt.s32.f32 %v620_v46  ;;  %v1729_v48 = vsel %vm135_vm1, %v786_v27, 2147483647 }
 0x11e   :  { %v957_v10 = vmax.f32 %v943_v12, %v956_v32  ;;  %v804_v6 = vshra.s32 %v1729_v48, 16 }
 0x11f   :  { %2398 = vst [vmem:[#allocation43_spill] sm:$0xff] %v1667_v33  ;;  %608 = vmin.xlane.f32.xlu1 %v1659_v11  ;;  %792 = vmin.xlane.f32.xlu0 %v1667_v33  ;;  %v123_v0 = vpop.permute.xlu0 %122 }
 0x120   :  { %vm1683_vm13 = vcmp.eq.s32.totalorder %v1448_v36, %v123_v0  ;;  %v2403_v0 = vmov 0   ;;  %v958_v38 = vrot.slane %v957_v10, 4  ;;  %v1781_v18 = vcvt.s32.f32 %v804_v6 }
 0x121   :  { %vm183_vm12 = vmand %vm1683_vm13, %vm139_vm2 }
 0x122   :  { %v185_v33 = vsel %vm183_vm12, 1, %v2403_v0  ;;  %vm275_vm14 = vmand %vm1683_vm13, %vm231_vm3  ;;  %vm2411_vm12 = vcmp.eq.f32.partialorder %v1419_v22, %v1586_v39 }
 0x123   :  { %623 = vmin.xlane.f32.xlu1 %v1678_v59  ;;  %v1715_v2 = vsel %vm131_vm0, %v185_v33, 2147483648  ;;  %v277_v24 = vsel %vm275_vm14, 1, %v2403_v0  ;;  %vm367_vm2 = vmand %vm1683_vm13, %vm323_vm6 }
 0x124   :  { %v189_v1 = vshra.s32 %v1715_v2, 16  ;;  %v1726_v7 = vsel %vm131_vm0, %v277_v24, 2147483648  ;;  %v369_v33 = vsel %vm367_vm2, 1, %v2403_v0  ;;  %vm184_vm3 = vmand %vm1695_vm11, %vm140_vm4 }
 0x125   :  { %vm459_vm6 = vmand %vm1683_vm13, %vm415_vm8  ;;  %v281_v27 = vshra.s32 %v1726_v7, 16  ;;  %v1750_v37 = vsel %vm131_vm0, %v369_v33, 2147483648  ;;  %v186_v44 = vsel %vm184_vm3, 1, %v2403_v0  ;;  %vm2413_vm3 = vcmp.eq.f32.partialorder %v1427_v26, %v1609_v58 }
 0x126   :  { %v1742_v24 = vcvt.s32.f32 %v189_v1  ;;  %v461_v14 = vsel %vm459_vm6, 1, %v2403_v0  ;;  %vm276_vm4 = vmand %vm1695_vm11, %vm232_vm5  ;;  %v373_v12 = vshra.s32 %v1750_v37, 16  ;;  %v1769_v1 = vsel %vm135_vm1, %v186_v44, 2147483648  ;;  %v2426_v9 = vld [vmem:[#allocation43_spill] sm:$0xff] }
 0x127   :  { %700 = vmin.xlane.f32.xlu1 %v1712_v5  ;;  %vm551_vm8 = vmand %vm1683_vm13, %vm507_vm10  ;;  %v1765_v32 = vcvt.s32.f32 %v281_v27  ;;  %v1784_v33 = vsel %vm131_vm0, %v461_v14, 2147483648  ;;  %v278_v27 = vsel %vm276_vm4, 1, %v2403_v0  ;;  %v204_v30 = vshra.s32 %v1769_v1, 16 }
 0x128   :  { %192 = vmax.xlane.f32.xlu0 %v1742_v24  ;;  %vm1776_vm5 = vmand %vm1695_vm11, %vm324_vm7  ;;  %v553_v44 = vsel %vm551_vm8, 1, %v2403_v0  ;;  %vm2408_vm7 = vcmp.eq.f32.partialorder %v1433_v29, %v1635_v49  ;;  %v959_v14 = vmax.f32 %v957_v10, %v958_v38  ;;  %v1813_v31 = vcvt.s32.f32 %v373_v12 }
 0x129   :  { %vm1792_vm9 = vmand %vm1683_vm13, %vm783_vm15  ;;  %v465_v20 = vshra.s32 %v1784_v33, 16  ;;  %v1817_v29 = vsel %vm135_vm1, %v278_v27, 2147483648  ;;  %v1821_v49 = vsel %vm131_vm0, %v553_v44, 2147483648  ;;  %v370_v22 = vsel %vm1776_vm5, 1, %v2403_v0 }
 0x12a   :  { %vm1803_vm10 = vmand %vm1695_vm11, %vm2408_vm7  ;;  %vm2412_vm15 = vcmp.eq.f32.partialorder %v1398_v13, %v1527_v62  ;;  %v1833_v38 = vcvt.s32.f32 %v204_v30  ;;  %v296_v12 = vshra.s32 %v1817_v29, 16  ;;  %v557_v27 = vshra.s32 %v1821_v49, 16 }
 0x12b   :  { %715 = vmin.xlane.f32.xlu1 %v1746_v53  ;;  %vm643_vm14 = vmand %vm1683_vm13, %vm2411_vm12  ;;  %v1841_v3 = vcvt.s32.f32 %v465_v20  ;;  %v1845_v44 = vsel %vm135_vm1, %v370_v22, 2147483648  ;;  %v960_v13 = vrot.slane %v959_v14, 2  ;;  %vm2415_vm8 = vcmp.eq.f32.partialorder %v1417_v21, %v1584_v34 }
 0x12c   :  { %284 = vmax.xlane.f32.xlu0 %v1765_v32  ;;  %v645_v10 = vsel %vm643_vm14, 1, %v2403_v0  ;;  %vm460_vm2 = vmand %vm1695_vm11, %vm2412_vm15  ;;  %v1859_v20 = vcvt.s32.f32 %v296_v12  ;;  %v388_v40 = vshra.s32 %v1845_v44, 16  ;;  %v1862_v22 = vcvt.s32.f32 %v557_v27 }
 0x12d   :  { %vm735_vm6 = vmand %vm1683_vm13, %vm2413_vm3  ;;  %v1849_v30 = vsel %vm131_vm0, %v645_v10, 2147483648  ;;  %v462_v39 = vsel %vm460_vm2, 1, %v2403_v0  ;;  %vm2414_vm13 = vcmp.eq.f32.partialorder %v1409_v17, %v1557_v19  ;;  %v961_v62 = vmax.f32 %v959_v14, %v960_v13 }
 0x12e   :  { %v737_v26 = vsel %vm735_vm6, 1, %v2403_v0  ;;  %vm552_vm4 = vmand %vm1695_vm11, %vm2414_vm13  ;;  %v649_v10 = vshra.s32 %v1849_v30, 16  ;;  %v1866_v58 = vsel %vm135_vm1, %v462_v39, 2147483648  ;;  %v1879_v27 = vcvt.s32.f32 %v388_v40 }
 0x12f   :  { %807 = vmin.xlane.f32.xlu1 %v1781_v18  ;;  %v1870_v63 = vsel %vm131_vm0, %v737_v26, 2147483648  ;;  %v554_v17 = vsel %vm552_vm4, 1, %v2403_v0  ;;  %vm644_vm5 = vmand %vm1695_vm11, %vm2415_vm8  ;;  %v962_v12 = vrot.slane %v961_v62, 1  ;;  %v480_v39 = vshra.s32 %v1866_v58, 16 }
 0x130   :  { %376 = vmax.xlane.f32.xlu0 %v1813_v31  ;;  %v1882_v14 = vcvt.s32.f32 %v649_v10  ;;  %v741_v13 = vshra.s32 %v1870_v63, 16  ;;  %v1886_v26 = vsel %vm135_vm1, %v554_v17, 2147483648  ;;  %v646_v21 = vsel %vm644_vm5, 1, %v2403_v0 }
 0x131   :  { %v963_v19 = vmax.f32 %v961_v62, %v962_v12  ;;  %vm2416_vm7 = vcmp.eq.f32.partialorder %v1425_v25, %v1607_v56  ;;  %v1896_v40 = vcvt.s32.f32 %v480_v39  ;;  %v572_v10 = vshra.s32 %v1886_v26, 16 }
 0x132   :  { %vm736_vm12 = vmand %vm1695_vm11, %vm2416_vm7  ;;  %v1899_v17 = vcvt.s32.f32 %v741_v13  ;;  %v1902_v62 = vsel %vm135_vm1, %v646_v21, 2147483648 }
 0x133   :  { %207 = vmax.xlane.f32.xlu1 %v1833_v38  ;;  %964 = vst [vmem:[#allocation13] sm:$0xff] %v963_v19  ;;  %v738_v12 = vsel %vm736_vm12, 1, %v2403_v0  ;;  %v1907_v25 = vcvt.s32.f32 %v572_v10  ;;  %v664_v46 = vshra.s32 %v1902_v62, 16  ;;  %v144_v10 = vand.u32 65535, %v1467_v41 }
 0x134   :  { %468 = vmax.xlane.f32.xlu0 %v1841_v3  ;;  %v1911_v19 = vsel %vm135_vm1, %v738_v12, 2147483648  ;;  %v159_v12 = vand.u32 65535, %v1493_v50  ;;  %v251_v41 = vand.u32 65535, %v1496_v51  ;;  %v343_v51 = vand.u32 65535, %v1525_v61 }
 0x135   :  { %2417 = vst [vmem:[#allocation44_spill] sm:$0xff] %v1911_v19  ;;  %v1914_v39 = vcvt.s32.f32 %v664_v46  ;;  %v756_v13 = vshra.s32 %v1911_v19, 16  ;;  %v146_v34 = vcvt.s32.f32 %v144_v10  ;;  %v328_v19 = vand.u32 65535, %v1522_v60 }
 0x136   :  { %v161_v36 = vcvt.s32.f32 %v159_v12  ;;  %v253_v10 = vcvt.s32.f32 %v251_v41  ;;  %v420_v12 = vand.u32 65535, %v1555_v16  ;;  %v2419_v41 = vld [vmem:[#allocation30_spill] sm:$0xff] }
 0x137   :  { %299 = vmax.xlane.f32.xlu1 %v1859_v20  ;;  %v1918_v21 = vcvt.s32.f32 %v756_v13 }
 0x138   :  { %560 = vmax.xlane.f32.xlu0 %v1862_v22 }
 0x139   :  { %2418 = vst [vmem:[#allocation45_spill] sm:$0xff] %v1918_v21 }
 0x13b   :  { %391 = vmax.xlane.f32.xlu1 %v1879_v27 }
 0x13c   :  { %652 = vmax.xlane.f32.xlu0 %v1882_v14 }
 0x13f   :  { %483 = vmax.xlane.f32.xlu1 %v1896_v40 }
 0x140   :  { %744 = vmax.xlane.f32.xlu0 %v1899_v17 }
 0x143   :  { %575 = vmax.xlane.f32.xlu1 %v1907_v25 }
 0x147   :  { %667 = vmax.xlane.f32.xlu1 %v1914_v39 }
 0x14b   :  { %759 = vmax.xlane.f32.xlu1 %v1918_v21  ;;  %v238_v21 = vcvt.s32.f32 %v236_v52  ;;  %v330_v52 = vcvt.s32.f32 %v328_v19  ;;  %v435_v19 = vand.u32 65535, %v1552_v15 }
 0x190   :  { %v1922_v56 = vpop.xlane.xlu0 %148 }
 0x191   :  { %vm150_vm11 = vcmp.eq.f32.partialorder %v1482_v47, %v1922_v56 }
 0x192   :  { %v151_v46 = vsel %vm150_vm11, %v146_v34, inf }
 0x193   :  { %152 = vmin.xlane.f32.xlu0 %v151_v46  ;;  %v437_v46 = vcvt.s32.f32 %v435_v19 }
 0x194   :  { %v1928_v43 = vpop.xlane.xlu1 %163  ;;  %v1930_v13 = vpop.xlane.xlu0 %240 }
 0x195   :  { %vm165_vm14 = vcmp.eq.f32.partialorder %v1511_v57, %v1928_v43  ;;  %vm242_vm15 = vcmp.eq.f32.partialorder %v1504_v55, %v1930_v13 }
 0x196   :  { %v166_v42 = vsel %vm165_vm14, %v161_v36, inf  ;;  %v243_v47 = vsel %vm242_vm15, %v238_v21, inf  ;;  %v345_v21 = vcvt.s32.f32 %v343_v51 }
 0x197   :  { %167 = vmin.xlane.f32.xlu1 %v166_v42  ;;  %244 = vmin.xlane.f32.xlu0 %v243_v47  ;;  %v512_v42 = vand.u32 65535, %v2419_v41  ;;  %v2420_v47 = vld [vmem:[#allocation33_spill] sm:$0xff] }
 0x198   :  { %v1938_v50 = vpop.xlane.xlu1 %255  ;;  %v1940_v34 = vpop.xlane.xlu0 %332  ;;  %v2424_v41 = vld [vmem:[#allocation41_spill] sm:$0xff] }
 0x199   :  { %vm257_vm2 = vcmp.eq.f32.partialorder %v1533_v4, %v1938_v50  ;;  %vm334_vm3 = vcmp.eq.f32.partialorder %v1541_v8, %v1940_v34  ;;  %v422_v8 = vcvt.s32.f32 %v420_v12  ;;  %v2423_v12 = vld [vmem:[#allocation38_spill] sm:$0xff] }
 0x19a   :  { %v258_v57 = vsel %vm257_vm2, %v253_v10, inf  ;;  %v335_v55 = vsel %vm334_vm3, %v330_v52, inf  ;;  %v2421_v52 = vld [vmem:[#allocation34_spill] sm:$0xff]  ;;  %v604_v19 = vand.u32 65535, %v2423_v12 }
 0x19b   :  { %259 = vmin.xlane.f32.xlu1 %v258_v57  ;;  %336 = vmin.xlane.f32.xlu0 %v335_v55  ;;  %v527_v51 = vand.u32 65535, %v2421_v52 }
 0x19c   :  { %v1947_v36 = vpop.xlane.xlu1 %347  ;;  %v1949_v60 = vpop.xlane.xlu0 %439 }
 0x19d   :  { %vm349_vm6 = vcmp.eq.f32.partialorder %v1563_v23, %v1947_v36  ;;  %vm441_vm13 = vcmp.eq.f32.partialorder %v1571_v28, %v1949_v60  ;;  %v514_v23 = vcvt.s32.f32 %v512_v42  ;;  %v2422_v28 = vld [vmem:[#allocation37_spill] sm:$0xff]  ;;  %v619_v42 = vand.u32 65535, %v2424_v41 }
 0x19e   :  { %v350_v61 = vsel %vm349_vm6, %v345_v21, inf  ;;  %v442_v10 = vsel %vm441_vm13, %v437_v46, inf  ;;  %v529_v21 = vcvt.s32.f32 %v527_v51  ;;  %v606_v46 = vcvt.s32.f32 %v604_v19 }
 0x19f   :  { %351 = vmin.xlane.f32.xlu1 %v350_v61  ;;  %v829_v51 = vsel %vm1792_vm9, 1, %v2403_v0 }
 0x1a0   :  { %v1957_v4 = vpop.xlane.xlu1 %424 }
 0x1a1   :  { %vm426_vm4 = vcmp.eq.f32.partialorder %v2420_v47, %v1957_v4 }
 0x1a2   :  { %v427_v16 = vsel %vm426_vm4, %v422_v8, inf }
 0x1a3   :  { %428 = vmin.xlane.f32.xlu0 %v427_v16  ;;  %443 = vmin.xlane.f32.xlu1 %v442_v10  ;;  %v621_v10 = vcvt.s32.f32 %v619_v42  ;;  %v803_v42 = vand.u32 65535, %v1729_v48 }
 0x1a4   :  { %v1962_v15 = vpop.xlane.xlu1 %516 }
 0x1a5   :  { %vm518_vm8 = vcmp.eq.f32.partialorder %v2422_v28, %v1962_v15  ;;  %v805_v6 = vcvt.s32.f32 %v803_v42 }
 0x1a6   :  { %v519_v57 = vsel %vm518_vm8, %v514_v23, inf  ;;  %v696_v23 = vand.u32 65535, %v1665_v45 }
 0x1a7   :  { %520 = vmin.xlane.f32.xlu0 %v519_v57  ;;  %v711_v57 = vand.u32 65535, %v1688_v54 }
 0x1a8   :  { %v1967_v55 = vpop.xlane.xlu1 %531 }
 0x1a9   :  { %vm533_vm5 = vcmp.eq.f32.partialorder %v1630_v35, %v1967_v55 }
 0x1aa   :  { %v534_v61 = vsel %vm533_vm5, %v529_v21, inf  ;;  %v2425_v21 = vld [vmem:[#allocation42_spill] sm:$0xff] }
 0x1ab   :  { %535 = vmin.xlane.f32.xlu1 %v534_v61  ;;  %v788_v12 = vand.u32 65535, %v2425_v21  ;;  %v830_v61 = vsel %vm1803_vm10, 1, %v2403_v0 }
 0x1ac   :  { %v1972_v8 = vpop.xlane.xlu1 %608  ;;  %v1980_v52 = vpop.xlane.xlu0 %792 }
 0x1ad   :  { %vm610_vm7 = vcmp.eq.f32.partialorder %v1659_v11, %v1972_v8  ;;  %v698_v11 = vcvt.s32.f32 %v696_v23  ;;  %vm794_vm9 = vcmp.eq.f32.partialorder %v2426_v9, %v1980_v52  ;;  %v790_v41 = vcvt.s32.f32 %v788_v12 }
 0x1ae   :  { %v611_v47 = vsel %vm610_vm7, %v606_v46, inf  ;;  %v713_v46 = vcvt.s32.f32 %v711_v57 }
 0x1af   :  { %612 = vmin.xlane.f32.xlu0 %v611_v47  ;;  %v795_v23 = vsel %vm794_vm9, %v790_v41, inf  ;;  %v372_v41 = vand.u32 65535, %v1750_v37  ;;  %v464_v37 = vand.u32 65535, %v1784_v33 }
 0x1b0   :  { %v1977_v16 = vpop.xlane.xlu1 %623 }
 0x1b1   :  { %vm625_vm12 = vcmp.eq.f32.partialorder %v1678_v59, %v1977_v16  ;;  %v1996_v59 = vsel %vm131_vm0, %v829_v51, 2147483648  ;;  %v188_v51 = vand.u32 65535, %v1715_v2  ;;  %v203_v2 = vand.u32 65535, %v1769_v1 }
 0x1b2   :  { %v626_v35 = vsel %vm625_vm12, %v621_v10, inf }
 0x1b3   :  { %627 = vmin.xlane.f32.xlu1 %v626_v35  ;;  %v2012_v35 = vsel %vm135_vm1, %v830_v61, 2147483648  ;;  %v190_v12 = vcvt.s32.f32 %v188_v51 }
 0x1b4   :  { %v1987_v28 = vpop.xlane.xlu1 %700 }
 0x1b5   :  { %v1991_v19 = vpop.xlane.xlu0 %192  ;;  %vm702_vm11 = vcmp.eq.f32.partialorder %v1712_v5, %v1987_v28  ;;  %v833_v5 = vshra.s32 %v1996_v59, 16 }
 0x1b6   :  { %v703_v45 = vsel %vm702_vm11, %v698_v11, inf  ;;  %v848_v11 = vshra.s32 %v2012_v35, 16  ;;  %vm194_vm15 = vcmp.eq.f32.partialorder %v1742_v24, %v1991_v19 }
 0x1b7   :  { %704 = vmin.xlane.f32.xlu0 %v703_v45  ;;  %v280_v45 = vand.u32 65535, %v1726_v7  ;;  %v195_v61 = vsel %vm194_vm15, %v190_v12, -inf  ;;  %v295_v7 = vand.u32 65535, %v1817_v29  ;;  %v387_v29 = vand.u32 65535, %v1845_v44 }
 0x1b8   :  { %v2003_v54 = vpop.xlane.xlu1 %715  ;;  %v2031_v9 = vcvt.s32.f32 %v848_v11  ;;  %v466_v11 = vcvt.s32.f32 %v464_v37  ;;  %v556_v44 = vand.u32 65535, %v1821_v49  ;;  %v648_v49 = vand.u32 65535, %v1849_v30 }
 0x1b9   :  { %v2006_v47 = vpop.xlane.xlu0 %284  ;;  %vm717_vm14 = vcmp.eq.f32.partialorder %v1746_v53, %v2003_v54  ;;  %v2021_v53 = vcvt.s32.f32 %v833_v5  ;;  %v282_v1 = vcvt.s32.f32 %v280_v45  ;;  %v740_v30 = vand.u32 65535, %v1870_v63  ;;  %v2428_v63 = vld [vmem:[#allocation45_spill] sm:$0xff] }
 0x1ba   :  { %v718_v10 = vsel %vm717_vm14, %v713_v46, inf  ;;  %vm286_vm3 = vcmp.eq.f32.partialorder %v1765_v32, %v2006_v47  ;;  %v205_v46 = vcvt.s32.f32 %v203_v2  ;;  %v558_v45 = vcvt.s32.f32 %v556_v44 }
 0x1bb   :  { %719 = vmin.xlane.f32.xlu1 %v718_v10  ;;  %796 = vmin.xlane.f32.xlu0 %v795_v23  ;;  %v287_v5 = vsel %vm286_vm3, %v282_v1, -inf  ;;  %v297_v10 = vcvt.s32.f32 %v295_v7  ;;  %v374_v23 = vcvt.s32.f32 %v372_v41  ;;  %v650_v7 = vcvt.s32.f32 %v648_v49 }
 0x1bc   :  { %v2014_v0 = vpop.xlane.xlu1 %807 }
 0x1bd   :  { %v2017_v48 = vpop.xlane.xlu0 %376  ;;  %vm809_vm10 = vcmp.eq.f32.partialorder %v1781_v18, %v2014_v0 }
 0x1be   :  { %v810_v57 = vsel %vm809_vm10, %v805_v6, inf  ;;  %vm378_vm13 = vcmp.eq.f32.partialorder %v1813_v31, %v2017_v48 }
 0x1bf   :  { %811 = vmin.xlane.f32.xlu1 %v810_v57  ;;  %836 = vmax.xlane.f32.xlu0 %v2021_v53  ;;  %v379_v51 = vsel %vm378_vm13, %v374_v23, -inf  ;;  %v479_v57 = vand.u32 65535, %v1866_v58  ;;  %v571_v58 = vand.u32 65535, %v1886_v26  ;;  %v663_v26 = vand.u32 65535, %v1902_v62 }
 0x1c0   :  { %v2027_v21 = vpop.xlane.xlu1 %207 }
 0x1c1   :  { %v2033_v18 = vpop.xlane.xlu0 %468  ;;  %vm209_vm2 = vcmp.eq.f32.partialorder %v1833_v38, %v2027_v21  ;;  %v573_v1 = vcvt.s32.f32 %v571_v58  ;;  %v155_v58 = vcvt.f32.s32 %v1922_v56  ;;  %v262_v56 = vcvt.f32.s32 %v1938_v50 }
 0x1c2   :  { %v210_v42 = vsel %vm209_vm2, %v205_v46, -inf  ;;  %vm470_vm8 = vcmp.eq.f32.partialorder %v1841_v3, %v2033_v18  ;;  %v354_v50 = vcvt.f32.s32 %v1947_v36 }
 0x1c3   :  { %851 = vmax.xlane.f32.xlu1 %v2031_v9  ;;  %196 = vmax.xlane.f32.xlu0 %v195_v61  ;;  %v471_v2 = vsel %vm470_vm8, %v466_v11, -inf }
 0x1c4   :  { %v2040_v24 = vpop.xlane.xlu1 %299 }
 0x1c5   :  { %vm301_vm6 = vcmp.eq.f32.partialorder %v1859_v20, %v2040_v24  ;;  %v2048_v38 = vpop.xlane.xlu0 %560  ;;  %v389_v20 = vcvt.s32.f32 %v387_v29 }
 0x1c6   :  { %v302_v6 = vsel %vm301_vm6, %v297_v10, -inf  ;;  %vm562_vm7 = vcmp.eq.f32.partialorder %v1862_v22, %v2048_v38  ;;  %v2427_v10 = vld [vmem:[#allocation44_spill] sm:$0xff] }
 0x1c7   :  { %211 = vmax.xlane.f32.xlu1 %v210_v42  ;;  %288 = vmax.xlane.f32.xlu0 %v287_v5  ;;  %v563_v46 = vsel %vm562_vm7, %v558_v45, -inf  ;;  %v742_v5 = vcvt.s32.f32 %v740_v30  ;;  %v755_v23 = vand.u32 65535, %v2427_v10  ;;  %v832_v30 = vand.u32 65535, %v1996_v59 }
 0x1c8   :  { %v2050_v32 = vpop.xlane.xlu1 %391 }
 0x1c9   :  { %vm393_vm4 = vcmp.eq.f32.partialorder %v1879_v27, %v2050_v32  ;;  %v2062_v12 = vpop.xlane.xlu0 %652  ;;  %v481_v27 = vcvt.s32.f32 %v479_v57  ;;  %v757_v37 = vcvt.s32.f32 %v755_v23 }
 0x1ca   :  { %v394_v33 = vsel %vm393_vm4, %v389_v20, -inf  ;;  %vm654_vm11 = vcmp.eq.f32.partialorder %v1882_v14, %v2062_v12 }
 0x1cb   :  { %303 = vmax.xlane.f32.xlu1 %v302_v6  ;;  %380 = vmax.xlane.f32.xlu0 %v379_v51  ;;  %v655_v42 = vsel %vm654_vm11, %v650_v7, -inf  ;;  %v170_v7 = vcvt.f32.s32 %v1928_v43  ;;  %v847_v43 = vand.u32 65535, %v2012_v35 }
 0x1cc   :  { %v2058_v31 = vpop.xlane.xlu1 %483 }
 0x1cd   :  { %vm485_vm5 = vcmp.eq.f32.partialorder %v1896_v40, %v2058_v31  ;;  %v2076_v40 = vpop.xlane.xlu0 %744  ;;  %v171_v23 = vshll.u32 %v170_v7, 16  ;;  %v1007_v7 = vld [vmem:[%s2327_s1] sm:$0xff] }
 0x1ce   :  { %v486_v61 = vsel %vm485_vm5, %v481_v27, -inf  ;;  %vm746_vm14 = vcmp.eq.f32.partialorder %v1899_v17, %v2076_v40 }
 0x1cf   :  { %395 = vmax.xlane.f32.xlu1 %v394_v33  ;;  %472 = vmax.xlane.f32.xlu0 %v471_v2  ;;  %v747_v62 = vsel %vm746_vm14, %v742_v5, -inf }
 0x1d0   :  { %v2068_v3 = vpop.xlane.xlu1 %575 }
 0x1d1   :  { %vm577_vm12 = vcmp.eq.f32.partialorder %v1907_v25, %v2068_v3  ;;  %v665_v25 = vcvt.s32.f32 %v663_v26  ;;  %v247_v26 = vcvt.f32.s32 %v1930_v13 }
 0x1d2   :  { %v578_v41 = vsel %vm577_vm12, %v573_v1, -inf  ;;  %v156_v1 = vshll.u32 %v155_v58, 16  ;;  %v263_v58 = vshll.u32 %v262_v56, 16 }
 0x1d3   :  { %487 = vmax.xlane.f32.xlu1 %v486_v61  ;;  %564 = vmax.xlane.f32.xlu0 %v563_v46 }
 0x1d4   :  { %v2078_v22 = vpop.xlane.xlu1 %667 }
 0x1d5   :  { %vm669_vm9 = vcmp.eq.f32.partialorder %v1914_v39, %v2078_v22 }
 0x1d6   :  { %v670_v29 = vsel %vm669_vm9, %v665_v25, -inf }
 0x1d7   :  { %579 = vmax.xlane.f32.xlu1 %v578_v41  ;;  %656 = vmax.xlane.f32.xlu0 %v655_v42 }
 0x1d8   :  { %v2086_v14 = vpop.xlane.xlu1 %759 }
 0x1d9   :  { %vm761_vm10 = vcmp.eq.f32.partialorder %v2428_v63, %v2086_v14 }
 0x1da   :  { %v762_v6 = vsel %vm761_vm10, %v757_v37, -inf  ;;  %v834_v37 = vcvt.s32.f32 %v832_v30 }
 0x1db   :  { %671 = vmax.xlane.f32.xlu1 %v670_v29  ;;  %748 = vmax.xlane.f32.xlu0 %v747_v62  ;;  %v248_v29 = vshll.u32 %v247_v26, 16  ;;  %v339_v62 = vcvt.f32.s32 %v1940_v34 }
 0x1dd   :  { %v340_v34 = vshll.u32 %v339_v62, 16  ;;  %v1009_v62 = vld [vmem:[#allocation2] sm:$0xff] }
 0x1df   :  { %763 = vmax.xlane.f32.xlu1 %v762_v6 }
 0x220   :  { %v153_v39 = vpop.xlane.xlu0 %152 }
 0x221   :  { %v154_v49 = vcvt.f32.s32 %v153_v39 }
 0x223   :  { %v157_v41 = vadd.s32 %v156_v1, %v154_v49 }
 0x224   :  { %v168_v51 = vpop.xlane.xlu1 %167  ;;  %v245_v20 = vpop.xlane.xlu0 %244 }
 0x225   :  { %v169_v42 = vcvt.f32.s32 %v168_v51  ;;  %v246_v25 = vcvt.f32.s32 %v245_v20  ;;  %v2429_v20 = vld [vmem:[#allocation19_spill] sm:$0xff] }
 0x226   :  { %vm173_vm15 = vcmp.eq.s32.totalorder %v2429_v20, %v157_v41 }
 0x227   :  { %v172_v13 = vadd.s32 %v171_v23, %v169_v42  ;;  %v249_v6 = vadd.s32 %v248_v29, %v246_v25  ;;  %v175_v26 = vsel %vm173_vm15, -inf, %v1007_v7  ;;  %v523_v42 = vcvt.f32.s32 %v1962_v15 }
 0x228   :  { %v260_v17 = vpop.xlane.xlu1 %259  ;;  %v337_v11 = vpop.xlane.xlu0 %336  ;;  %v177_v56 = vsel %vm131_vm0, %v175_v26, -inf }
 0x229   :  { %v261_v63 = vcvt.f32.s32 %v260_v17  ;;  %v338_v59 = vcvt.f32.s32 %v337_v11  ;;  %v431_v17 = vcvt.f32.s32 %v1957_v4  ;;  %v849_v11 = vcvt.s32.f32 %v847_v43 }
 0x22a   :  { %vm174_vm3 = vcmp.eq.s32.totalorder %v2429_v20, %v172_v13  ;;  %vm265_vm6 = vcmp.eq.s32.totalorder %v2429_v20, %v249_v6  ;;  %v355_v4 = vshll.u32 %v354_v50, 16  ;;  %v538_v43 = vcvt.f32.s32 %v1967_v55 }
 0x22b   :  { %v264_v35 = vadd.s32 %v263_v58, %v261_v63  ;;  %v341_v30 = vadd.s32 %v340_v34, %v338_v59  ;;  %v267_v63 = vsel %vm265_vm6, -inf, %v1009_v62  ;;  %v524_v13 = vshll.u32 %v523_v42, 16 }
 0x22c   :  { %v352_v57 = vpop.xlane.xlu1 %351  ;;  %v615_v6 = vcvt.f32.s32 %v1972_v8  ;;  %v269_v58 = vsel %vm131_vm0, %v267_v63, -inf  ;;  %v539_v8 = vshll.u32 %v538_v43, 16  ;;  %v1015_v63 = vld [vmem:[#allocation7] sm:$0xff]  ;;  %v814_v43 = vcvt.f32.s32 %v2014_v0 }
 0x22d   :  { %v353_v1 = vcvt.f32.s32 %v352_v57  ;;  %v432_v57 = vshll.u32 %v431_v17, 16  ;;  %vm266_vm4 = vcmp.eq.s32.totalorder %v2429_v20, %v264_v35  ;;  %vm357_vm8 = vcmp.eq.s32.totalorder %v2429_v20, %v341_v30  ;;  %v1011_v17 = vld [vmem:[#allocation5] sm:$0xff] }
 0x22f   :  { %v356_v23 = vadd.s32 %v355_v4, %v353_v1  ;;  %v630_v1 = vcvt.f32.s32 %v1977_v16  ;;  %v1012_v4 = vld [vmem:[#allocation5 + $0x8] sm:$0x3]  ;;  %v1013_v16 = vld [vmem:[%s2330_s4] sm:$0xff] }
 0x230   :  { %v2091_v44 = vpop.xlane.xlu0 %428  ;;  %v2093_v33 = vpop.xlane.xlu1 %443 }
 0x231   :  { %v430_v41 = vcvt.f32.s32 %v2091_v44  ;;  %v1008_v44 = vld [vmem:[%s2327_s1 + $0x8] sm:$0x3]  ;;  %vm358_vm5 = vcmp.eq.s32.totalorder %v2429_v20, %v356_v23  ;;  %v631_v42 = vshll.u32 %v630_v1, 16 }
 0x232   :  { %v176_v29 = vsel %vm174_vm3, -inf, %v1008_v44 }
 0x233   :  { %v180_v59 = vsel %vm135_vm1, %v176_v29, -inf }
 0x234   :  { %v2095_v2 = vpop.xlane.xlu0 %520 }
 0x235   :  { %v522_v15 = vcvt.f32.s32 %v2095_v2  ;;  %v359_v2 = vsel %vm357_vm8, -inf, %v1011_v17  ;;  %v815_v17 = vshll.u32 %v814_v43, 16  ;;  %v475_v43 = vcvt.f32.s32 %v2033_v18 }
 0x236   :  { %v361_v26 = vsel %vm131_vm0, %v359_v2, -inf  ;;  %v659_v18 = vcvt.f32.s32 %v2062_v12  ;;  %vm872_vm8 = vcmp.eq.s32.totalorder %v2429_v20, 1 }
 0x237   :  { %v525_v35 = vadd.s32 %v524_v13, %v522_v15 }
 0x238   :  { %v2097_v27 = vpop.xlane.xlu1 %535 }
 0x239   :  { %v537_v50 = vcvt.f32.s32 %v2097_v27  ;;  %v707_v27 = vcvt.f32.s32 %v1987_v28  ;;  %vm541_vm11 = vcmp.eq.s32.totalorder %v2429_v20, %v525_v35 }
 0x23b   :  { %v540_v30 = vadd.s32 %v539_v8, %v537_v50  ;;  %v1017_v50 = vld [vmem:[#allocation8] sm:$0xff] }
 0x23c   :  { %v2099_v45 = vpop.xlane.xlu0 %612 }
 0x23d   :  { %v614_v55 = vcvt.f32.s32 %v2099_v45  ;;  %v360_v45 = vsel %vm358_vm5, -inf, %v1012_v4  ;;  %vm542_vm9 = vcmp.eq.s32.totalorder %v2429_v20, %v540_v30 }
 0x23e   :  { %v364_v23 = vsel %vm135_vm1, %v360_v45, -inf  ;;  %v1022_v45 = vld [vmem:[#allocation11 + $0x8] sm:$0x3] }
 0x240   :  { %v2102_v61 = vpop.xlane.xlu1 %627 }
 0x244   :  { %v2104_v46 = vpop.xlane.xlu0 %704 }
 0x245   :  { %v706_v28 = vcvt.f32.s32 %v2104_v46  ;;  %v1014_v46 = vld [vmem:[%s2330_s4 + $0x8] sm:$0x3]  ;;  %s1196_s4 = smov [#allocation13]  }
 0x246   :  { %s973_s3 = sshll.u32 %s1196_s4, 4  ;;  %s974_s3 = int_to_ptr.vmem [resolvable:$true] %s973_s3 }
 0x247   :  { %s1155_s14 = scalar_lea.vmem %s974_s3, 128  ;;  %p1160_p7 = scmp.lt.s32.totalorder %s974_s3, %s974_s3 }
 0x248   :  { %v2109_v5 = vpop.xlane.xlu1 %719  ;;  %v2111_v10 = vpop.xlane.xlu0 %796  ;;  %p1156_p6 = scmp.ne.s32.totalorder %s974_s3, %s1155_s14  ;;  %p1161_p8 = scmp.lt.s32.totalorder %s1155_s14, %s1155_s14 }
 0x24a   :  { %p1162_p9 = por %p1161_p8, %p1160_p7 }
 0x24c   :  { %v2116_v39 = vpop.xlane.xlu1 %811  ;;  %v2118_v51 = vpop.xlane.xlu0 %836  ;;  %p1163_p10 = pnand %p1162_p9, %p1156_p6 }
 0x24d   :  { %vm838_vm2 = vcmp.eq.f32.partialorder %v2021_v53, %v2118_v51  ;;  %v446_v53 = vcvt.f32.s32 %v1949_v60  ;;  %v445_v60 = vcvt.f32.s32 %v2093_v33  ;;  %v1010_v33 = vld [vmem:[#allocation2 + $0x8] sm:$0x3] }
 0x24e   :  { %v839_v49 = vsel %vm838_vm2, %v834_v37, -inf  ;;  %v268_v34 = vsel %vm266_vm4, -inf, %v1010_v33  ;;  %vm867_vm4 = vcmp.eq.s32.totalorder %v2429_v20, 0 }
 0x24f   :  { %840 = vmax.xlane.f32.xlu0 %v839_v49  ;;  %v447_v37 = vshll.u32 %v446_v53, 16  ;;  %v272_v7 = vsel %vm135_vm1, %v268_v34, -inf  ;;  %v813_v34 = vcvt.f32.s32 %v2116_v39 }
 0x250   :  { %v2129_v36 = vpop.xlane.xlu1 %851 }
 0x251   :  { %vm853_vm13 = vcmp.eq.f32.partialorder %v2031_v9, %v2129_v36  ;;  %v433_v9 = vadd.s32 %v432_v57, %v430_v41  ;;  %v448_v49 = vadd.s32 %v447_v37, %v445_v60  ;;  %v629_v41 = vcvt.f32.s32 %v2102_v61 }
 0x252   :  { %v854_v25 = vsel %vm853_vm13, %v849_v11, -inf  ;;  %v616_v11 = vshll.u32 %v615_v6, 16  ;;  %v799_v61 = vcvt.f32.s32 %v1980_v52  ;;  %v543_v60 = vsel %vm541_vm11, -inf, %v1015_v63 }
 0x253   :  { %855 = vmax.xlane.f32.xlu1 %v854_v25  ;;  %178 = vmax.xlane.f32.xlu0 %v177_v56  ;;  %vm449_vm7 = vcmp.eq.s32.totalorder %v2429_v20, %v433_v9  ;;  %vm450_vm12 = vcmp.eq.s32.totalorder %v2429_v20, %v448_v49  ;;  %v708_v25 = vshll.u32 %v707_v27, 16  ;;  %v722_v56 = vcvt.f32.s32 %v2003_v54  ;;  %v1018_v49 = vld [vmem:[#allocation8 + $0x8] sm:$0x3]  ;;  %v1020_v27 = vld [vmem:[#allocation10 + $0x8] sm:$0x3] }
 0x254   :  { %v451_v53 = vsel %vm449_vm7, -inf, %v1013_v16  ;;  %v617_v57 = vadd.s32 %v616_v11, %v614_v55  ;;  %v632_v29 = vadd.s32 %v631_v42, %v629_v41  ;;  %v452_v62 = vsel %vm450_vm12, -inf, %v1014_v46  ;;  %v1019_v55 = vld [vmem:[#allocation10] sm:$0xff] }
 0x255   :  { %v453_v44 = vsel %vm131_vm0, %v451_v53, -inf  ;;  %v709_v52 = vadd.s32 %v708_v25, %v706_v28  ;;  %v721_v9 = vcvt.f32.s32 %v2109_v5  ;;  %v798_v54 = vcvt.f32.s32 %v2111_v10  ;;  %v212_v28 = vpop.xlane.xlu1 %211 }
 0x256   :  { %vm633_vm14 = vcmp.eq.s32.totalorder %v2429_v20, %v617_v57  ;;  %v800_v15 = vshll.u32 %v799_v61, 16  ;;  %v723_v37 = vshll.u32 %v722_v56, 16  ;;  %v456_v13 = vsel %vm135_vm1, %v452_v62, -inf  ;;  %v197_v57 = vpop.xlane.xlu0 %196 }
 0x257   :  { %181 = vmax.xlane.f32.xlu1 %v180_v59  ;;  %270 = vmax.xlane.f32.xlu0 %v269_v58  ;;  %v545_v6 = vsel %vm131_vm0, %v543_v60, -inf  ;;  %v1016_v59 = vld [vmem:[#allocation7 + $0x8] sm:$0x3]  ;;  %v635_v33 = vsel %vm633_vm14, -inf, %v1017_v50  ;;  %vm634_vm10 = vcmp.eq.s32.totalorder %v2429_v20, %v632_v29  ;;  %vm725_vm15 = vcmp.eq.s32.totalorder %v2429_v20, %v709_v52 }
 0x258   :  { %v544_v58 = vsel %vm542_vm9, -inf, %v1016_v59  ;;  %v724_v5 = vadd.s32 %v723_v37, %v721_v9  ;;  %v801_v10 = vadd.s32 %v800_v15, %v798_v54  ;;  %v637_v2 = vsel %vm131_vm0, %v635_v33, -inf }
 0x259   :  { %v548_v0 = vsel %vm135_vm1, %v544_v58, -inf  ;;  %v636_v35 = vsel %vm634_vm10, -inf, %v1018_v49  ;;  %v727_v8 = vsel %vm725_vm15, -inf, %v1019_v55  ;;  %v816_v1 = vadd.s32 %v815_v17, %v813_v34  ;;  %v304_v42 = vpop.xlane.xlu1 %303 }
 0x25a   :  { %vm726_vm2 = vcmp.eq.s32.totalorder %v2429_v20, %v724_v5  ;;  %vm817_vm3 = vcmp.eq.s32.totalorder %v2429_v20, %v801_v10  ;;  %v640_v39 = vsel %vm135_vm1, %v636_v35, -inf  ;;  %v729_v11 = vsel %vm131_vm0, %v727_v8, -inf  ;;  %v289_v61 = vpop.xlane.xlu0 %288 }
 0x25b   :  { %273 = vmax.xlane.f32.xlu1 %v272_v7  ;;  %362 = vmax.xlane.f32.xlu0 %v361_v26  ;;  %v728_v7 = vsel %vm726_vm2, -inf, %v1020_v27  ;;  %v1021_v26 = vld [vmem:[#allocation11] sm:$0xff]  ;;  %vm818_vm6 = vcmp.eq.s32.totalorder %v2429_v20, %v816_v1  ;;  %v199_v60 = vcvt.f32.s32 %v1991_v19  ;;  %v291_v9 = vcvt.f32.s32 %v2006_v47  ;;  %v2430_v1 = vld [vmem:[#allocation21_spill] sm:$0xff] }
 0x25c   :  { %v819_v30 = vsel %vm817_vm3, -inf, %v1021_v26  ;;  %v732_v41 = vsel %vm135_vm1, %v728_v7, -inf  ;;  %v820_v16 = vsel %vm818_vm6, -inf, %v1022_v45  ;;  %v383_v54 = vcvt.f32.s32 %v2017_v48 }
 0x25d   :  { %v821_v4 = vsel %vm131_vm0, %v819_v30, -inf  ;;  %v824_v53 = vsel %vm135_vm1, %v820_v16, -inf  ;;  %v396_v56 = vpop.xlane.xlu1 %395  ;;  %v198_v15 = vcvt.f32.s32 %v197_v57  ;;  %v214_v37 = vcvt.f32.s32 %v2027_v21 }
 0x25e   :  { %v381_v25 = vpop.xlane.xlu0 %380  ;;  %v567_v19 = vcvt.f32.s32 %v2048_v38  ;;  %v398_v50 = vcvt.f32.s32 %v2050_v32  ;;  %v213_v33 = vcvt.f32.s32 %v212_v28  ;;  %v292_v47 = vshll.u32 %v291_v9, 16  ;;  %v2432_v28 = vld [vmem:[#allocation20_spill] sm:$0xff] }
 0x25f   :  { %365 = vmax.xlane.f32.xlu1 %v364_v23  ;;  %454 = vmax.xlane.f32.xlu0 %v453_v44  ;;  %v384_v5 = vshll.u32 %v383_v54, 16  ;;  %v290_v10 = vcvt.f32.s32 %v289_v61  ;;  %v215_v34 = vshll.u32 %v214_v37, 16  ;;  %v476_v21 = vshll.u32 %v475_v43, 16 }
 0x260   :  { %v490_v17 = vcvt.f32.s32 %v2058_v31  ;;  %v674_v38 = vcvt.f32.s32 %v2078_v22  ;;  %v568_v35 = vshll.u32 %v567_v19, 16  ;;  %v399_v55 = vshll.u32 %v398_v50, 16  ;;  %v2433_v50 = vld [vmem:[#allocation22_spill] sm:$0xff] }
 0x261   :  { %v2195_v44 = vpop.xlane.xlu1 %487  ;;  %v216_v8 = vadd.s32 %v215_v34, %v213_v33  ;;  %v305_v12 = vcvt.f32.s32 %v304_v42  ;;  %v382_v27 = vcvt.f32.s32 %v381_v25  ;;  %v2227_v31 = vshll.u32 %v659_v18, 16 }
 0x262   :  { %v2193_v23 = vpop.xlane.xlu0 %472  ;;  %v491_v7 = vshll.u32 %v490_v17, 16  ;;  %v2231_v30 = vshll.u32 %v674_v38, 16  ;;  %vm877_vm11 = vcmp.eq.s32.totalorder %v2429_v20, 2  ;;  %vm882_vm14 = vcmp.eq.s32.totalorder %v2429_v20, 3 }
 0x263   :  { %457 = vmax.xlane.f32.xlu1 %v456_v13  ;;  %546 = vmax.xlane.f32.xlu0 %v545_v6  ;;  %v200_v13 = vshll.u32 %v199_v60, 16  ;;  %v306_v6 = vcvt.f32.s32 %v2040_v24  ;;  %vm218_vm1 = vcmp.gt.s32.totalorder %v216_v8, 0  ;;  %v385_v25 = vadd.s32 %v384_v5, %v382_v27 }
 0x264   :  { %vm887_vm2 = vcmp.eq.s32.totalorder %v2429_v20, 4 }
 0x265   :  { %v2199_v46 = vpop.xlane.xlu1 %579  ;;  %v201_v48 = vadd.s32 %v200_v13, %v198_v15  ;;  %v307_v24 = vshll.u32 %v306_v6, 16  ;;  %v489_v15 = vcvt.f32.s32 %v2195_v44  ;;  %vm401_vm7 = vcmp.gt.s32.totalorder %v385_v25, 0 }
 0x266   :  { %v2197_v29 = vpop.xlane.xlu0 %564  ;;  %v581_v34 = vcvt.f32.s32 %v2199_v46 }
 0x267   :  { %549 = vmax.xlane.f32.xlu1 %v548_v0  ;;  %638 = vmax.xlane.f32.xlu0 %v637_v2  ;;  %v751_v0 = vcvt.f32.s32 %v2076_v40  ;;  %v582_v2 = vcvt.f32.s32 %v2068_v3  ;;  %vm217_vm0 = vcmp.gt.s32.totalorder %v201_v48, 0  ;;  %v397_v40 = vcvt.f32.s32 %v396_v56 }
 0x268   :  { %v308_v42 = vadd.s32 %v307_v24, %v305_v12  ;;  %v566_v48 = vcvt.f32.s32 %v2197_v29  ;;  %v2435_v29 = vld [vmem:[#allocation24_spill] sm:$0xff] }
 0x269   :  { %v2203_v63 = vpop.xlane.xlu1 %671  ;;  %v2229_v3 = vshll.u32 %v751_v0, 16  ;;  %v583_v22 = vshll.u32 %v582_v2, 16  ;;  %v400_v56 = vadd.s32 %v399_v55, %v397_v40  ;;  %v492_v0 = vadd.s32 %v491_v7, %v489_v15  ;;  %v2439_v15 = vld [vmem:[#allocation28_spill] sm:$0xff] }
 0x26a   :  { %v2201_v62 = vpop.xlane.xlu0 %656  ;;  %vm310_vm5 = vcmp.gt.s32.totalorder %v308_v42, 0  ;;  %v569_v8 = vadd.s32 %v568_v35, %v566_v48  ;;  %v673_v40 = vcvt.f32.s32 %v2203_v63 }
 0x26b   :  { %641 = vmax.xlane.f32.xlu1 %v640_v39  ;;  %730 = vmax.xlane.f32.xlu0 %v729_v11  ;;  %v293_v11 = vadd.s32 %v292_v47, %v290_v10  ;;  %v2434_v47 = vld [vmem:[#allocation25_spill] sm:$0xff]  ;;  %vm402_vm12 = vcmp.gt.s32.totalorder %v400_v56, 0  ;;  %v584_v7 = vadd.s32 %v583_v22, %v581_v34  ;;  %vm494_vm10 = vcmp.gt.s32.totalorder %v492_v0, 0 }
 0x26c   :  { %vm585_vm15 = vcmp.gt.s32.totalorder %v569_v8, 0  ;;  %v843_v22 = vcvt.f32.s32 %v2118_v51  ;;  %v2443_v8 = vld [vmem:[#allocation35_spill] sm:$0xff] }
 0x26d   :  { %v2213_v59 = vpop.xlane.xlu1 %763  ;;  %vm309_vm13 = vcmp.gt.s32.totalorder %v293_v11, 0  ;;  %vm586_vm3 = vcmp.gt.s32.totalorder %v584_v7, 0 }
 0x26e   :  { %v2206_v52 = vpop.xlane.xlu0 %748 }
 0x26f   :  { %733 = vmax.xlane.f32.xlu1 %v732_v41  ;;  %822 = vmax.xlane.f32.xlu0 %v821_v4  ;;  %v474_v41 = vcvt.f32.s32 %v2193_v23  ;;  %v766_v23 = vcvt.f32.s32 %v2086_v14 }
 0x271   :  { %v477_v54 = vadd.s32 %v476_v21, %v474_v41  ;;  %v767_v11 = vshll.u32 %v766_v23, 16 }
 0x273   :  { %825 = vmax.xlane.f32.xlu1 %v824_v53  ;;  %v2431_v53 = vld [vmem:[#allocation23_spill] sm:$0xff]  ;;  %vm493_vm9 = vcmp.gt.s32.totalorder %v477_v54, 0  ;;  %v765_v54 = vcvt.f32.s32 %v2213_v59  ;;  %v858_v59 = vcvt.f32.s32 %v2129_v36 }
 0x2dc   :  { %v2215_v58 = vpop.xlane.xlu0 %840 }
 0x2dd   :  { %v842_v51 = vcvt.f32.s32 %v2215_v58  ;;  %v768_v58 = vadd.s32 %v767_v11, %v765_v54 }
 0x2e0   :  { %v2224_v49 = vpop.xlane.xlu1 %855  ;;  %v179_v32 = vpop.xlane.xlu0 %178 }
 0x2e1   :  { %v219_v39 = vsub.f32 %v2430_v1, %v179_v32  ;;  %v2436_v32 = vld [vmem:[#allocation27_spill] sm:$0xff]  ;;  %v658_v1 = vcvt.f32.s32 %v2201_v62 }
 0x2e3   :  { %v221_v26 = vsel %vm217_vm0, %v219_v39, 0.0  ;;  %vm892_vm0 = vcmp.eq.s32.totalorder %v2429_v20, 5 }
 0x2e4   :  { %v182_v4 = vpop.xlane.xlu1 %181  ;;  %v271_v45 = vpop.xlane.xlu0 %270  ;;  %v868_v16 = vmul.f32 0.5, %v221_v26 }
 0x2e5   :  { %v220_v57 = vsub.f32 %v2431_v53, %v182_v4  ;;  %v311_v61 = vsub.f32 %v2432_v28, %v271_v45  ;;  %v750_v4 = vcvt.f32.s32 %v2206_v52  ;;  %v2437_v45 = vld [vmem:[#allocation26_spill] sm:$0xff]  ;;  %v2438_v53 = vld [vmem:[#allocation29_spill] sm:$0xff]  ;;  %v661_v28 = vadd.s32 %v2227_v31, %v658_v1 }
 0x2e6   :  { %v870_v6 = vsel %vm867_vm4, %v868_v16, 0.0  ;;  %v676_v52 = vadd.s32 %v2231_v30, %v673_v40 }
 0x2e7   :  { %v222_v60 = vsel %vm218_vm1, %v220_v57, 0.0  ;;  %v313_v9 = vsel %vm309_vm13, %v311_v61, 0.0  ;;  %v753_v31 = vadd.s32 %v2229_v3, %v750_v4  ;;  %vm677_vm6 = vcmp.gt.s32.totalorder %v661_v28, 0 }
 0x2e8   :  { %v873_v37 = vmul.f32 0.5, %v313_v9  ;;  %v274_v43 = vpop.xlane.xlu1 %273  ;;  %v363_v13 = vpop.xlane.xlu0 %362  ;;  %v869_v19 = vmul.f32 0.5, %v222_v60  ;;  %vm678_vm1 = vcmp.gt.s32.totalorder %v676_v52, 0 }
 0x2e9   :  { %v312_v33 = vsub.f32 %v2433_v50, %v274_v43  ;;  %v403_v5 = vsub.f32 %v2434_v47, %v363_v13  ;;  %v2440_v43 = vld [vmem:[#allocation32_spill] sm:$0xff]  ;;  %vm769_vm13 = vcmp.gt.s32.totalorder %v753_v31, 0 }
 0x2ea   :  { %v875_v14 = vsel %vm872_vm8, %v873_v37, %v870_v6  ;;  %v871_v2 = vsel %vm867_vm4, %v869_v19, 0.0  ;;  %v844_v19 = vshll.u32 %v843_v22, 16  ;;  %vm770_vm4 = vcmp.gt.s32.totalorder %v768_v58, 0 }
 0x2eb   :  { %v314_v44 = vsel %vm310_vm5, %v312_v33, 0.0  ;;  %v405_v10 = vsel %vm401_vm7, %v403_v5, 0.0  ;;  %vm897_vm5 = vcmp.eq.s32.totalorder %v2429_v20, 6  ;;  %vm902_vm7 = vcmp.eq.s32.totalorder %v2429_v20, 7 }
 0x2ec   :  { %v874_v21 = vmul.f32 0.5, %v314_v44  ;;  %v878_v18 = vmul.f32 0.5, %v405_v10  ;;  %v366_v17 = vpop.xlane.xlu1 %365  ;;  %v455_v24 = vpop.xlane.xlu0 %454  ;;  %v2442_v10 = vld [vmem:[#allocation36_spill] sm:$0xff] }
 0x2ed   :  { %v404_v38 = vsub.f32 %v2435_v29, %v366_v17  ;;  %v495_v55 = vsub.f32 %v2436_v32, %v455_v24 }
 0x2ee   :  { %v876_v39 = vsel %vm872_vm8, %v874_v21, %v871_v2  ;;  %v880_v46 = vsel %vm877_vm11, %v878_v18, %v875_v14  ;;  %v2441_v14 = vld [vmem:[#allocation31_spill] sm:$0xff]  ;;  %v845_v21 = vadd.s32 %v844_v19, %v842_v51  ;;  %v857_v18 = vcvt.f32.s32 %v2224_v49 }
 0x2ef   :  { %v406_v12 = vsel %vm402_vm12, %v404_v38, 0.0  ;;  %v497_v27 = vsel %vm493_vm9, %v495_v55, 0.0  ;;  %v859_v2 = vshll.u32 %v858_v59, 16  ;;  %vm907_vm12 = vcmask 64512  }
 0x2f0   :  { %v879_v26 = vmul.f32 0.5, %v406_v12  ;;  %v883_v35 = vmul.f32 0.5, %v497_v27  ;;  %v458_v41 = vpop.xlane.xlu1 %457  ;;  %v547_v62 = vpop.xlane.xlu0 %546  ;;  %vm861_vm8 = vcmp.gt.s32.totalorder %v845_v21, 0  ;;  %vm911_vm9 = vcmask 58368  }
 0x2f1   :  { %v496_v16 = vsub.f32 %v2437_v45, %v458_v41  ;;  %v587_v57 = vsub.f32 %v2438_v53, %v547_v62  ;;  %v860_v49 = vadd.s32 %v859_v2, %v857_v18 }
 0x2f2   :  { %v881_v61 = vsel %vm877_vm11, %v879_v26, %v876_v39  ;;  %v885_v63 = vsel %vm882_vm14, %v883_v35, %v880_v46  ;;  %v2444_v39 = vld [vmem:[#allocation39_spill] sm:$0xff]  ;;  %v2445_v35 = vld [vmem:[#allocation40_spill] sm:$0xff] }
 0x2f3   :  { %v498_v42 = vsel %vm494_vm10, %v496_v16, 0.0  ;;  %v589_v25 = vsel %vm585_vm15, %v587_v57, 0.0  ;;  %vm862_vm11 = vcmp.gt.s32.totalorder %v860_v49, 0 }
 0x2f4   :  { %v884_v56 = vmul.f32 0.5, %v498_v42  ;;  %v888_v60 = vmul.f32 0.5, %v589_v25  ;;  %v550_v9 = vpop.xlane.xlu1 %549  ;;  %v639_v23 = vpop.xlane.xlu0 %638 }
 0x2f5   :  { %v588_v37 = vsub.f32 %v2439_v15, %v550_v9  ;;  %v679_v13 = vsub.f32 %v2440_v43, %v639_v23 }
 0x2f6   :  { %v886_v6 = vsel %vm882_vm14, %v884_v56, %v881_v61  ;;  %v890_v30 = vsel %vm887_vm2, %v888_v60, %v885_v63 }
 0x2f7   :  { %v590_v50 = vsel %vm586_vm3, %v588_v37, 0.0  ;;  %v681_v33 = vsel %vm677_vm6, %v679_v13, 0.0 }
 0x2f8   :  { %v889_v3 = vmul.f32 0.5, %v590_v50  ;;  %v893_v47 = vmul.f32 0.5, %v681_v33  ;;  %v642_v5 = vpop.xlane.xlu1 %641  ;;  %v731_v48 = vpop.xlane.xlu0 %730 }
 0x2f9   :  { %v680_v44 = vsub.f32 %v2441_v14, %v642_v5  ;;  %v771_v34 = vsub.f32 %v2442_v10, %v731_v48 }
 0x2fa   :  { %v891_v17 = vsel %vm887_vm2, %v889_v3, %v886_v6  ;;  %v895_v36 = vsel %vm892_vm0, %v893_v47, %v890_v30 }
 0x2fb   :  { %v682_v24 = vsel %vm678_vm1, %v680_v44, 0.0  ;;  %v773_v0 = vsel %vm769_vm13, %v771_v34, 0.0 }
 0x2fc   :  { %v894_v29 = vmul.f32 0.5, %v682_v24  ;;  %v734_v38 = vpop.xlane.xlu1 %733  ;;  %v823_v32 = vpop.xlane.xlu0 %822  ;;  %v898_v55 = vmul.f32 0.5, %v773_v0 }
 0x2fd   :  { %v772_v1 = vsub.f32 %v2443_v8, %v734_v38  ;;  %v863_v46 = vsub.f32 %v2444_v39, %v823_v32 }
 0x2fe   :  { %v896_v11 = vsel %vm892_vm0, %v894_v29, %v891_v17  ;;  %v900_v62 = vsel %vm897_vm5, %v898_v55, %v895_v36 }
 0x2ff   :  { %v774_v12 = vsel %vm770_vm4, %v772_v1, 0.0  ;;  %v865_v27 = vsel %vm861_vm8, %v863_v46, 0.0 }
 0x300   :  { %v903_v7 = vmul.f32 0.5, %v865_v27  ;;  %v826_v40 = vpop.xlane.xlu1 %825  ;;  %v899_v26 = vmul.f32 0.5, %v774_v12 }
 0x301   :  { %v864_v41 = vsub.f32 %v2445_v35, %v826_v40 }
 0x302   :  { %v905_v4 = vsel %vm902_vm7, %v903_v7, %v900_v62  ;;  %v901_v57 = vsel %vm897_vm5, %v899_v26, %v896_v11 }
 0x303   :  { %v866_v45 = vsel %vm862_vm11, %v864_v41, 0.0  ;;  %v908_v16 = vsel %vm907_vm12, %v905_v4, -inf }
 0x304   :  { %v904_v53 = vmul.f32 0.5, %v866_v45  ;;  %909 = vmax.xlane.f32.xlu0 %v908_v16 }
 0x306   :  { %v906_v28 = vsel %vm902_vm7, %v904_v53, %v901_v57 }
 0x307   :  { %v912_v61 = vsel %vm911_vm9, %v906_v28, -inf }
 0x308   :  { %913 = vmax.xlane.f32.xlu1 %v912_v61 }
 0x391   :  { %v910_v63 = vpop.xlane.xlu0 %909 }
 0x392   :  { %v915_v22 = vsub.f32 %v905_v4, %v910_v63 }
 0x394   :  { %v917_v42 = vmul.f32 1.442695, %v915_v22 }
 0x395   :  { %v914_v25 = vpop.xlane.xlu1 %913 }
 0x396   :  { %999 = vpow2.f32 %v917_v42  ;;  %v916_v52 = vsub.f32 %v906_v28, %v914_v25 }
 0x398   :  { %v919_v56 = vmul.f32 1.442695, %v916_v52 }
 0x39a   :  { %1001 = vpow2.f32 %v919_v56 }
 0x3a0   :  { %v1000_v60 = vpop.eup %999 }
 0x3a1   :  { %v921_v9 = vsel %vm907_vm12, %v1000_v60, 0.0 }
 0x3a2   :  { %922 = vadd.xlane.f32.xlu0 %v921_v9 }
 0x3a4   :  { %v1002_v23 = vpop.eup %1001 }
 0x3a5   :  { %v924_v20 = vsel %vm911_vm9, %v1002_v23, 0.0 }
 0x3a6   :  { %925 = vadd.xlane.f32.xlu1 %v924_v20 }
 0x3a7   :  { %1166 = shalt.err (!%p1163_p10)
}
 0x3a8   :  { %s1167_s2 = scalar_lea.hbm %s2336_s10, 128 }
 0x3a9   :  { %p1168_p11 = scmp.ne.s32.totalorder %s2336_s10, %s1167_s2  ;;  %p1171_p12 = scmp.lt.u32.totalorder %s1167_s2, %s2336_s10 }
 0x3ab   :  { %p1173_p13 = pnand %p1171_p12, %p1168_p11 }
 0x3ad   :  { %1176 = shalt.err (!%p1173_p13)
}
 0x3ae   :  { %976 = dma.vmem_to_hbm [thread:$0]  %s974_s3, 128, %s2336_s10, [#allocation4]  }
 0x42f   :  { %v923_v31 = vpop.xlane.xlu0 %922 }
 0x430   :  { %1003 = vrcp.f32 %v923_v31 }
 0x433   :  { %v926_v54 = vpop.xlane.xlu1 %925 }
 0x434   :  { %1005 = vrcp.f32 %v926_v54 }
 0x43a   :  { %v1004_v15 = vpop.eup %1003 }
 0x43b   :  { %v928_v37 = vmul.f32 %v1004_v15, %v1000_v60 }
 0x43d   :  { %931 = vst.msk [vmem:[%s2335_s9] sm:$0xff] %vm907_vm12, %v928_v37 }
 0x43e   :  { %v1006_v43 = vpop.eup %1005 }
 0x43f   :  { %v930_v13 = vmul.f32 %v1006_v43, %v1002_v23 }
 0x441   :  { %932 = vst.msk [vmem:[%s2335_s9 + $0x8] sm:$0x3] %vm911_vm9, %v930_v13 }
 0x442   :  { %1185 = dma.done.wait [#allocation4], 128  }
 0x443   :  { %1186 = vsyncadd [#allocation4], 4294967168 }
 0x444   :  { %982 = vsyncpa [#allocation3], 1 }
 0x445   :  { %983 = vsyncpa [#allocation6], 1 }
 0x446   :  { %984 = vsyncpa [#allocation9], 1 }
 0x447   :  { %985 = vsyncpa [#allocation12], 1 }
 0x448   :  { %986 = vsyncpa [#allocation4], 1 }

</bundles_post_ra>
